<compile_context>
chip_gen: v7x
topology: tpu7x:2x2x1
jax: 0.10.0
libtpu: 0.0.40
codegen_flags: <defaults>
</compile_context>

<pallas_src>
import functools

import jax
import jax.numpy as jnp
from jax.experimental import pallas as pl
from jax.experimental.pallas import tpu as pltpu

IN_DIM = 108
DIMS = [108, 256, 1024, 512, 128, 1]
PAD_IN = 128                 # 108 padded up to one lane tile
OUT_ROWS = 8                 # fc5's single output feature padded to one sublane tile
DEFAULT_BATCH_TILE = 512     # review: 256 paid ~15-40% per-step pipeline overhead
MAX_BATCH_TILE = 1024        # keeps activations comfortably inside v7x's 64 MiB VMEM
VMEM_LIMIT_BYTES = 48 * 1024 * 1024  # > v5e's 16 MiB scoped default, < v7x's 64 MiB physical


def _wrenchnet_kernel(x_ref,
                      w1_ref, b1_ref,
                      w2_ref, b2_ref,
                      w3_ref, b3_ref,
                      w4_ref, b4_ref,
                      w5_ref, b5_ref,
                      o_ref,
                      *, bf16_epilogue):
    """Entire MLP hot path: 5 MXU matmuls (bf16 operands, f32 acc) + bias + ReLU in VMEM."""

    def hidden_layer(h, w_ref, b_ref):
        acc = jnp.dot(h, w_ref[...], preferred_element_type=jnp.float32)
        if bf16_epilogue:
            # v6e/v7x: bf16 VALU -> cast the f32 accumulator first, then bias+ReLU in bf16
            # (halves vadd/vmax op count on the co-binding VALU slot).
            y = acc.astype(jnp.bfloat16) + b_ref[...].astype(jnp.bfloat16)
            return jnp.maximum(y, 0.0)
        # v5e: no bf16 VALU -> keep f32 epilogue, cast once at the end.
        return jnp.maximum(acc + b_ref[...], 0.0).astype(jnp.bfloat16)

    h = x_ref[...]                        # (Bt, 128) bf16; last 20 lanes are zero pad
    h = hidden_layer(h, w1_ref, b1_ref)   # fc1 + ReLU (dropout = identity, eval)
    h = hidden_layer(h, w2_ref, b2_ref)   # fc2 + ReLU
    h = hidden_layer(h, w3_ref, b3_ref)   # fc3 + ReLU
    h = hidden_layer(h, w4_ref, b4_ref)   # fc4 + ReLU -> (Bt, 128) bf16

    # fc5 (linear): w5_ref is (8, 128) bf16 with row 0 holding W5's single column.
    # Contract both minor dims (== w5 @ h.T on the MXU) -> lane-dense (8, Bt) f32 result;
    # only row 0 is real, rows 1..7 are zero-weight padding discarded by the wrapper.
    out = jax.lax.dot_general(
        w5_ref[...], h,
        dimension_numbers=(((1,), (1,)), ((), ())),
        preferred_element_type=jnp.float32) + b5_ref[...]
    o_ref[0] = out


def init_params(key):
    """Deterministic parameter init matching the nn.Linear shapes.

    PyTorch stores Linear weight as (out, in); here we keep the transposed
    (in, out) f32 form so the kernel does x @ W + b directly.
    """
    params = {}
    for i in range(5):
        key, kw, kb = jax.random.split(key, 3)
        fan_in, fan_out = DIMS[i], DIMS[i + 1]
        bound = 1.0 / jnp.sqrt(jnp.float32(fan_in))
        params[f"w{i+1}"] = jax.random.uniform(
            kw, (fan_in, fan_out), jnp.float32, -bound, bound)
        params[f"b{i+1}"] = jax.random.uniform(
            kb, (fan_out,), jnp.float32, -bound, bound)
    return params


def prepare_params(params):
    """Pad + cast ONCE, outside the jitted forward (hoists per-call pad/copy traffic).

    W1 rows padded 108 -> 128 with zeros (exact).  W5's single column is stored as row 0
    of an (8, 128) bf16 slab (rows 1..7 zero) so the kernel can emit a lane-dense output.
    Weights are bf16 (MXU-native); biases stay f32 (cast to bf16 in-kernel when the
    bf16 epilogue is used — a (1, N) cast, negligible).
    """
    p = {}
    w1 = params["w1"].astype(jnp.float32)
    p["w1"] = (jnp.zeros((PAD_IN, w1.shape[1]), jnp.float32)
               .at[:IN_DIM, :].set(w1).astype(jnp.bfloat16))
    p["b1"] = params["b1"].reshape(1, -1).astype(jnp.float32)
    for i in (2, 3, 4):
        p[f"w{i}"] = params[f"w{i}"].astype(jnp.bfloat16)
        p[f"b{i}"] = params[f"b{i}"].reshape(1, -1).astype(jnp.float32)
    w5 = params["w5"].astype(jnp.float32)          # (128, 1)
    p["w5"] = (jnp.zeros((OUT_ROWS, DIMS[4]), jnp.float32)
               .at[0, :].set(w5[:, 0]).astype(jnp.bfloat16))
    p["b5"] = params["b5"].reshape(1, 1).astype(jnp.float32)
    return p


def _round_up(n, m):
    return ((n + m - 1) // m) * m


def _cdiv(a, b):
    return -(-a // b)


@functools.lru_cache(maxsize=None)
def _num_tensorcores():
    """TensorCores per chip (2 on v7x, 1 on v5e/v6e). Conservative fallback: 1."""
    try:
        nc = getattr(jax.devices()[0], "num_cores", None)
        if nc:
            return int(nc)
    except Exception:
        pass
    try:
        info = pltpu.get_tpu_info()
        for name in ("num_cores", "num_tensorcores", "tensorcores_per_chip",
                     "cores_per_chip"):
            v = getattr(info, name, None)
            if v:
                return int(v)
    except Exception:
        pass
    return 1


@functools.lru_cache(maxsize=None)
def _has_bf16_valu():
    """v6e/v7x VPUs have bf16 VALU; v5e (and older) do not."""
    try:
        kind = jax.devices()[0].device_kind.lower()
        for old in ("v2", "v3", "v4", "v5"):
            if old in kind:
                return False
    except Exception:
        pass
    return True


def _pick_batch_tile(batch, requested, num_cores):
    """Multiple-of-8 batch tile that minimizes pad waste; v7x-only multi-core split."""
    batch = max(int(batch), 1)
    req = max(8, _round_up(int(requested), 8))
    # Very large batches: allow a bigger tile to further amortize per-step overhead.
    if req == DEFAULT_BATCH_TILE and batch >= 2 * MAX_BATCH_TILE * max(num_cores, 1):
        req = MAX_BATCH_TILE
    req = min(req, MAX_BATCH_TILE)
    n_steps = max(1, _cdiv(batch, req))
    # Only chips with >1 TensorCore (v7x) need >= num_cores grid steps for the
    # "parallel" batch axis to shard; on v5e/v6e extra steps are pure overhead.
    if num_cores > 1 and batch >= 8 * num_cores:
        n_steps = max(n_steps, num_cores)
    # Smallest multiple-of-8 tile covering the batch in n_steps (minimizes padded rows,
    # e.g. B=300 now pads to 304 instead of 512).
    tile = _round_up(_cdiv(batch, n_steps), 8)
    return min(tile, MAX_BATCH_TILE)


@functools.partial(jax.jit, static_argnames=("batch_tile", "bf16_epilogue"))
def _forward_impl(x, p, batch_tile, bf16_epilogue):
    B = x.shape[0]
    x = x.reshape(B, -1).astype(jnp.float32)   # matches x.view(x.size(0), -1)
    B_pad = _round_up(B, batch_tile)
    n_tiles = B_pad // batch_tile
    # Pad AND cast to bf16 in one fused op: halves the per-tile input DMA bytes.
    x_pad = (jnp.zeros((B_pad, PAD_IN), jnp.bfloat16)
             .at[:B, :IN_DIM].set(x.astype(jnp.bfloat16)))

    def rep(arr):
        # Grid-invariant operand: constant index_map -> DMA'd only on the first step.
        return pl.BlockSpec(arr.shape, lambda i: (0, 0))

    out_pad = pl.pallas_call(
        functools.partial(_wrenchnet_kernel, bf16_epilogue=bf16_epilogue),
        out_shape=jax.ShapeDtypeStruct((n_tiles, OUT_ROWS, batch_tile), jnp.float32),
        grid_spec=pltpu.PrefetchScalarGridSpec(
            num_scalar_prefetch=0,
            grid=(n_tiles,),
            in_specs=[
                pl.BlockSpec((batch_tile, PAD_IN), lambda i: (i, 0)),   # x tile (bf16)
                rep(p["w1"]), rep(p["b1"]),
                rep(p["w2"]), rep(p["b2"]),
                rep(p["w3"]), rep(p["b3"]),
                rep(p["w4"]), rep(p["b4"]),
                rep(p["w5"]), rep(p["b5"]),
            ],
            # Lane-dense output: (n_tiles, 8, Bt); only row 0 of each tile is real.
            out_specs=pl.BlockSpec((1, OUT_ROWS, batch_tile), lambda i: (i, 0, 0)),
        ),
        compiler_params=pltpu.CompilerParams(
            dimension_semantics=("parallel",),       # batch axis shards across TCs (v7x)
            vmem_limit_bytes=VMEM_LIMIT_BYTES),       # v5e scoped default (16 MiB) is too small
    )(x_pad,
      p["w1"], p["b1"], p["w2"], p["b2"], p["w3"], p["b3"],
      p["w4"], p["b4"], p["w5"], p["b5"])

    # (n_tiles, 8, Bt) -> take the real row, restore batch order, drop padded rows.
    return out_pad[:, 0, :].reshape(B_pad, 1)[:B, :]


def wrenchnet_forward(x, padded_params, batch_tile=DEFAULT_BATCH_TILE):
    """x: (B, 108) float32 -> (B, 1) float32. `padded_params` comes from prepare_params()."""
    tile = _pick_batch_tile(x.shape[0], batch_tile, _num_tensorcores())
    return _forward_impl(x, padded_params, batch_tile=tile,
                         bf16_epilogue=_has_bf16_valu())


def _reference_forward(x, p):
    """Plain-JAX f32 reference using the same (bf16-rounded, zero-padded) weights."""
    B = x.shape[0]
    h = jnp.zeros((B, PAD_IN), jnp.float32).at[:, :IN_DIM].set(
        x.reshape(B, -1).astype(jnp.float32))
    for i in range(1, 5):
        h = jnp.maximum(h @ p[f"w{i}"].astype(jnp.float32) + p[f"b{i}"], 0.0)
    out = h @ p["w5"].astype(jnp.float32).T + p["b5"]   # (B, 8); only col 0 is real
    return out[:, :1]


if __name__ == "__main__":
    key = jax.random.PRNGKey(0)
    key, kparam, kx = jax.random.split(key, 3)

    params = init_params(kparam)        # f32 params matching the nn.Linear shapes
    padded = prepare_params(params)     # pad + bf16-cast once (hoisted out of forward)

    # Small deterministic input: batch=8, 108 features (e.g. flattened 4x27).
    B = 8
    x = jax.random.normal(kx, (B, IN_DIM), jnp.float32)

    out = wrenchnet_forward(x, padded)
    out = jax.block_until_ready(out)

    ref = _reference_forward(x, padded)
    assert out.shape == (B, 1), out.shape
    # bf16 activations (and, on v6e/v7x, bf16 bias+ReLU epilogue) vs f32 reference ->
    # relaxed tolerance.
    assert jnp.allclose(out, ref, atol=5e-2, rtol=5e-2), (
        f"max abs diff = {jnp.max(jnp.abs(out - ref))}")

    print("KERNEL_OK")
</pallas_src>

<mosaic_0001>
module attributes {stable_mosaic.version = 11 : i64} {
  func.func @_wrenchnet_kernel(%arg0: i32, %arg1: memref<8x128xbf16, #tpu.memory_space<vmem>>, %arg2: memref<128x256xbf16, #tpu.memory_space<vmem>>, %arg3: memref<1x256xf32, #tpu.memory_space<vmem>>, %arg4: memref<256x1024xbf16, #tpu.memory_space<vmem>>, %arg5: memref<1x1024xf32, #tpu.memory_space<vmem>>, %arg6: memref<1024x512xbf16, #tpu.memory_space<vmem>>, %arg7: memref<1x512xf32, #tpu.memory_space<vmem>>, %arg8: memref<512x128xbf16, #tpu.memory_space<vmem>>, %arg9: memref<1x128xf32, #tpu.memory_space<vmem>>, %arg10: memref<8x128xbf16, #tpu.memory_space<vmem>>, %arg11: memref<1x1xf32, #tpu.memory_space<vmem>>, %arg12: memref<1x8x8xf32, #tpu.memory_space<vmem>>) attributes {dimension_semantics = [#tpu.dimension_semantics<parallel>], iteration_bounds = array<i64: 1>, scalar_prefetch = 0 : i64, scratch_operands = 0 : i64, tpu.core_type = #tpu.core_type<tc>, window_params = [{transform_indices = @transform_0, window_bounds = array<i64: 8, 128>}, {pipeline_mode = #tpu.pipeline_mode<synchronous>, transform_indices = @transform_1, window_bounds = array<i64: 128, 256>}, {pipeline_mode = #tpu.pipeline_mode<synchronous>, transform_indices = @transform_2, window_bounds = array<i64: 1, 256>}, {pipeline_mode = #tpu.pipeline_mode<synchronous>, transform_indices = @transform_3, window_bounds = array<i64: 256, 1024>}, {pipeline_mode = #tpu.pipeline_mode<synchronous>, transform_indices = @transform_4, window_bounds = array<i64: 1, 1024>}, {pipeline_mode = #tpu.pipeline_mode<synchronous>, transform_indices = @transform_5, window_bounds = array<i64: 1024, 512>}, {pipeline_mode = #tpu.pipeline_mode<synchronous>, transform_indices = @transform_6, window_bounds = array<i64: 1, 512>}, {pipeline_mode = #tpu.pipeline_mode<synchronous>, transform_indices = @transform_7, window_bounds = array<i64: 512, 128>}, {pipeline_mode = #tpu.pipeline_mode<synchronous>, transform_indices = @transform_8, window_bounds = array<i64: 1, 128>}, {pipeline_mode = #tpu.pipeline_mode<synchronous>, transform_indices = @transform_9, window_bounds = array<i64: 8, 128>}, {pipeline_mode = #tpu.pipeline_mode<synchronous>, transform_indices = @transform_10, window_bounds = array<i64: 1, 1>}, {transform_indices = @transform_11, window_bounds = array<i64: 1, 8, 8>}]} {
    %c0 = arith.constant 0 : index
    %c0_0 = arith.constant 0 : index
    %0 = vector.load %arg1[%c0, %c0_0] : memref<8x128xbf16, #tpu.memory_space<vmem>>, vector<8x128xbf16>
    %c0_1 = arith.constant 0 : index
    %c0_2 = arith.constant 0 : index
    %1 = vector.load %arg2[%c0_1, %c0_2] : memref<128x256xbf16, #tpu.memory_space<vmem>>, vector<128x256xbf16>
    %cst = arith.constant dense<0.000000e+00> : vector<8x256xf32>
    %2 = tpu.matmul %0, %1, %cst {dimension_numbers = #tpu.dot_dimension_numbers<[1], [0], [0], [1], [0, 0, 1, 1], [], []>} : vector<8x128xbf16>, vector<128x256xbf16>, vector<8x256xf32> -> vector<8x256xf32>
    %3 = arith.truncf %2 : vector<8x256xf32> to vector<8x256xbf16>
    %c0_3 = arith.constant 0 : index
    %c0_4 = arith.constant 0 : index
    %4 = vector.load %arg3[%c0_3, %c0_4] : memref<1x256xf32, #tpu.memory_space<vmem>>, vector<1x256xf32>
    %5 = arith.truncf %4 : vector<1x256xf32> to vector<1x256xbf16>
    %6 = vector.broadcast %5 : vector<1x256xbf16> to vector<8x256xbf16>
    %7 = arith.addf %3, %6 : vector<8x256xbf16>
    %cst_5 = arith.constant 0.000000e+00 : bf16
    %8 = vector.broadcast %cst_5 : bf16 to vector<8x256xbf16>
    %9 = arith.maximumf %7, %8 : vector<8x256xbf16>
    %c0_6 = arith.constant 0 : index
    %c0_7 = arith.constant 0 : index
    %10 = vector.load %arg4[%c0_6, %c0_7] : memref<256x1024xbf16, #tpu.memory_space<vmem>>, vector<256x1024xbf16>
    %cst_8 = arith.constant dense<0.000000e+00> : vector<8x1024xf32>
    %11 = tpu.matmul %9, %10, %cst_8 {dimension_numbers = #tpu.dot_dimension_numbers<[1], [0], [0], [1], [0, 0, 1, 1], [], []>} : vector<8x256xbf16>, vector<256x1024xbf16>, vector<8x1024xf32> -> vector<8x1024xf32>
    %12 = arith.truncf %11 : vector<8x1024xf32> to vector<8x1024xbf16>
    %c0_9 = arith.constant 0 : index
    %c0_10 = arith.constant 0 : index
    %13 = vector.load %arg5[%c0_9, %c0_10] : memref<1x1024xf32, #tpu.memory_space<vmem>>, vector<1x1024xf32>
    %14 = arith.truncf %13 : vector<1x1024xf32> to vector<1x1024xbf16>
    %15 = vector.broadcast %14 : vector<1x1024xbf16> to vector<8x1024xbf16>
    %16 = arith.addf %12, %15 : vector<8x1024xbf16>
    %cst_11 = arith.constant 0.000000e+00 : bf16
    %17 = vector.broadcast %cst_11 : bf16 to vector<8x1024xbf16>
    %18 = arith.maximumf %16, %17 : vector<8x1024xbf16>
    %c0_12 = arith.constant 0 : index
    %c0_13 = arith.constant 0 : index
    %19 = vector.load %arg6[%c0_12, %c0_13] : memref<1024x512xbf16, #tpu.memory_space<vmem>>, vector<1024x512xbf16>
    %cst_14 = arith.constant dense<0.000000e+00> : vector<8x512xf32>
    %20 = tpu.matmul %18, %19, %cst_14 {dimension_numbers = #tpu.dot_dimension_numbers<[1], [0], [0], [1], [0, 0, 1, 1], [], []>} : vector<8x1024xbf16>, vector<1024x512xbf16>, vector<8x512xf32> -> vector<8x512xf32>
    %21 = arith.truncf %20 : vector<8x512xf32> to vector<8x512xbf16>
    %c0_15 = arith.constant 0 : index
    %c0_16 = arith.constant 0 : index
    %22 = vector.load %arg7[%c0_15, %c0_16] : memref<1x512xf32, #tpu.memory_space<vmem>>, vector<1x512xf32>
    %23 = arith.truncf %22 : vector<1x512xf32> to vector<1x512xbf16>
    %24 = vector.broadcast %23 : vector<1x512xbf16> to vector<8x512xbf16>
    %25 = arith.addf %21, %24 : vector<8x512xbf16>
    %cst_17 = arith.constant 0.000000e+00 : bf16
    %26 = vector.broadcast %cst_17 : bf16 to vector<8x512xbf16>
    %27 = arith.maximumf %25, %26 : vector<8x512xbf16>
    %c0_18 = arith.constant 0 : index
    %c0_19 = arith.constant 0 : index
    %28 = vector.load %arg8[%c0_18, %c0_19] : memref<512x128xbf16, #tpu.memory_space<vmem>>, vector<512x128xbf16>
    %cst_20 = arith.constant dense<0.000000e+00> : vector<8x128xf32>
    %29 = tpu.matmul %27, %28, %cst_20 {dimension_numbers = #tpu.dot_dimension_numbers<[1], [0], [0], [1], [0, 0, 1, 1], [], []>} : vector<8x512xbf16>, vector<512x128xbf16>, vector<8x128xf32> -> vector<8x128xf32>
    %30 = arith.truncf %29 : vector<8x128xf32> to vector<8x128xbf16>
    %c0_21 = arith.constant 0 : index
    %c0_22 = arith.constant 0 : index
    %31 = vector.load %arg9[%c0_21, %c0_22] : memref<1x128xf32, #tpu.memory_space<vmem>>, vector<1x128xf32>
    %32 = arith.truncf %31 : vector<1x128xf32> to vector<1x128xbf16>
    %33 = vector.broadcast %32 : vector<1x128xbf16> to vector<8x128xbf16>
    %34 = arith.addf %30, %33 : vector<8x128xbf16>
    %cst_23 = arith.constant 0.000000e+00 : bf16
    %35 = vector.broadcast %cst_23 : bf16 to vector<8x128xbf16>
    %36 = arith.maximumf %34, %35 : vector<8x128xbf16>
    %c0_24 = arith.constant 0 : index
    %c0_25 = arith.constant 0 : index
    %37 = vector.load %arg10[%c0_24, %c0_25] : memref<8x128xbf16, #tpu.memory_space<vmem>>, vector<8x128xbf16>
    %cst_26 = arith.constant dense<0.000000e+00> : vector<8x8xf32>
    %38 = tpu.matmul %37, %36, %cst_26 {dimension_numbers = #tpu.dot_dimension_numbers<[1], [1], [0], [0], [0, 0, 1, 0], [], []>} : vector<8x128xbf16>, vector<8x128xbf16>, vector<8x8xf32> -> vector<8x8xf32>
    %c0_27 = arith.constant 0 : index
    %c0_28 = arith.constant 0 : index
    %39 = vector.load %arg11[%c0_27, %c0_28] : memref<1x1xf32, #tpu.memory_space<vmem>>, vector<1x1xf32>
    %40 = vector.broadcast %39 : vector<1x1xf32> to vector<8x8xf32>
    %41 = arith.addf %38, %40 : vector<8x8xf32>
    %c0_29 = arith.constant 0 : index
    %c0_30 = arith.constant 0 : index
    %c0_31 = arith.constant 0 : index
    %42 = vector.load %arg12[%c0_29, %c0_30, %c0_31] : memref<1x8x8xf32, #tpu.memory_space<vmem>>, vector<1x8x8xf32>
    %43 = vector.shape_cast %42 : vector<1x8x8xf32> to vector<8x8xf32>
    %44 = vector.shape_cast %41 : vector<8x8xf32> to vector<1x8x8xf32>
    tpu.vector_store %arg12[%c0_29, %c0_30, %c0_31], %44 {strides = array<i32>} : memref<1x8x8xf32, #tpu.memory_space<vmem>>, vector<1x8x8xf32>,
    return
  }
  func.func @transform_0(%arg0: i32) -> (i32, i32) {
    %c0_i32 = arith.constant 0 : i32
    %c0_i32_0 = arith.constant 0 : i32
    return %arg0, %c0_i32 : i32, i32
  }
  func.func @transform_1(%arg0: i32) -> (i32, i32) {
    %c0_i32 = arith.constant 0 : i32
    %c0_i32_0 = arith.constant 0 : i32
    %c0_i32_1 = arith.constant 0 : i32
    return %c0_i32, %c0_i32_0 : i32, i32
  }
  func.func @transform_2(%arg0: i32) -> (i32, i32) {
    %c0_i32 = arith.constant 0 : i32
    %c0_i32_0 = arith.constant 0 : i32
    %c0_i32_1 = arith.constant 0 : i32
    return %c0_i32, %c0_i32_0 : i32, i32
  }
  func.func @transform_3(%arg0: i32) -> (i32, i32) {
    %c0_i32 = arith.constant 0 : i32
    %c0_i32_0 = arith.constant 0 : i32
    %c0_i32_1 = arith.constant 0 : i32
    return %c0_i32, %c0_i32_0 : i32, i32
  }
  func.func @transform_4(%arg0: i32) -> (i32, i32) {
    %c0_i32 = arith.constant 0 : i32
    %c0_i32_0 = arith.constant 0 : i32
    %c0_i32_1 = arith.constant 0 : i32
    return %c0_i32, %c0_i32_0 : i32, i32
  }
  func.func @transform_5(%arg0: i32) -> (i32, i32) {
    %c0_i32 = arith.constant 0 : i32
    %c0_i32_0 = arith.constant 0 : i32
    %c0_i32_1 = arith.constant 0 : i32
    return %c0_i32, %c0_i32_0 : i32, i32
  }
  func.func @transform_6(%arg0: i32) -> (i32, i32) {
    %c0_i32 = arith.constant 0 : i32
    %c0_i32_0 = arith.constant 0 : i32
    %c0_i32_1 = arith.constant 0 : i32
    return %c0_i32, %c0_i32_0 : i32, i32
  }
  func.func @transform_7(%arg0: i32) -> (i32, i32) {
    %c0_i32 = arith.constant 0 : i32
    %c0_i32_0 = arith.constant 0 : i32
    %c0_i32_1 = arith.constant 0 : i32
    return %c0_i32, %c0_i32_0 : i32, i32
  }
  func.func @transform_8(%arg0: i32) -> (i32, i32) {
    %c0_i32 = arith.constant 0 : i32
    %c0_i32_0 = arith.constant 0 : i32
    %c0_i32_1 = arith.constant 0 : i32
    return %c0_i32, %c0_i32_0 : i32, i32
  }
  func.func @transform_9(%arg0: i32) -> (i32, i32) {
    %c0_i32 = arith.constant 0 : i32
    %c0_i32_0 = arith.constant 0 : i32
    %c0_i32_1 = arith.constant 0 : i32
    return %c0_i32, %c0_i32_0 : i32, i32
  }
  func.func @transform_10(%arg0: i32) -> (i32, i32) {
    %c0_i32 = arith.constant 0 : i32
    %c0_i32_0 = arith.constant 0 : i32
    %c0_i32_1 = arith.constant 0 : i32
    return %c0_i32, %c0_i32_0 : i32, i32
  }
  func.func @transform_11(%arg0: i32) -> (i32, i32, i32) {
    %c0_i32 = arith.constant 0 : i32
    %c0_i32_0 = arith.constant 0 : i32
    %c0_i32_1 = arith.constant 0 : i32
    return %arg0, %c0_i32, %c0_i32_0 : i32, i32, i32
  }
}

</mosaic_0001>

<bundles_post_ra>
// kernel: _forward_impl.1
= control target key start
LH: loop header
LB: loop body
LE: loop exit
PB: predicated region body
PF: predicated region fallthrough
CT: control target
= control target key end

     0   :  { %s4962_s0 = inlined_call_operand.vmem [shape: bf16[8,128], index: 0, kind: input, shape index: {}]   ;;  %s4963_s1 = inlined_call_operand.hbm [shape: bf16[128,256], index: 1, kind: input, shape index: {}]   ;;  %s4964_s2 = inlined_call_operand.vmem [shape: f32[1,256], index: 2, kind: input, shape index: {}]   ;;  %s4965_s3 = inlined_call_operand.hbm [shape: bf16[256,1024], index: 3, kind: input, shape index: {}]   ;;  %s4966_s4 = inlined_call_operand.vmem [shape: f32[1,1024], index: 4, kind: input, shape index: {}]   ;;  %s4967_s5 = inlined_call_operand.hbm [shape: bf16[1024,512], index: 5, kind: input, shape index: {}]   ;;  %s4968_s6 = inlined_call_operand.vmem [shape: f32[1,512], index: 6, kind: input, shape index: {}]   ;;  %s4969_s7 = inlined_call_operand.hbm [shape: bf16[512,128], index: 7, kind: input, shape index: {}]   ;;  %s4970_s8 = inlined_call_operand.vmem [shape: f32[1,128], index: 8, kind: input, shape index: {}]   ;;  %s4971_s9 = inlined_call_operand.vmem [shape: bf16[8,128], index: 9, kind: input, shape index: {}]   ;;  %s4972_s10 = inlined_call_operand.<no memory space> [shape: f32[1,1], index: 10, kind: input, shape index: {}]   ;;  %s4973_s11 = inlined_call_operand.vmem [shape: f32[1,8,8], index: 11, kind: output, shape index: {}]  }
   0x1   :  { %v16_v0 = vstv %s4972_s10 }
   0x2   :  { %17 = vst [vmem:[#allocation2] sm:$0x1] %v16_v0 }
   0x3   :  { %18 = vsyncpa [#allocation4], 0 }
   0x4   :  { %19 = vsyncpa [#allocation6], 0 }
   0x5   :  { %20 = vsyncpa [#allocation9], 0  ;;  %s4727_s19 = smov [#allocation5]   ;;  %s4633_s23 = scalar_lea.hbm %s4965_s3, 16384 }
   0x6   :  { %s42_s20 = sshll.u32 %s4727_s19, 4  ;;  %p4634_p0 = scmp.ne.s32.totalorder %s4965_s3, %s4633_s23  ;;  %s43_s20 = int_to_ptr.vmem [resolvable:$true] %s42_s20 }
   0x7   :  { %p4637_p1 = scmp.lt.u32.totalorder %s4633_s23, %s4965_s3 }
   0x9   :  { %p4639_p2 = pnand %p4637_p1, %p4634_p0 }
   0xb   :  { %4642 = shalt.err (!%p4639_p2)
}
   0xc   :  { %s4643_s10 = scalar_lea.vmem %s43_s20, 16384  ;;  %p4648_p4 = scmp.lt.s32.totalorder %s43_s20, %s43_s20 }
   0xd   :  { %p4644_p3 = scmp.ne.s32.totalorder %s43_s20, %s4643_s10  ;;  %p4649_p5 = scmp.lt.s32.totalorder %s4643_s10, %s4643_s10 }
   0xf   :  { %p4650_p6 = por %p4649_p5, %p4648_p4 }
  0x11   :  { %p4651_p7 = pnand %p4650_p6, %p4644_p3 }
  0x13   :  { %4654 = shalt.err (!%p4651_p7)
}
  0x14   :  { %s4728_s28 = smov 512   ;;  %s4729_s29 = smov 32  }
  0x15   :  { %48 = dma.hbm_to_vmem [thread:$0]  %s4965_s3, 16384, %s43_s20, [#allocation6], %s4728_s28, %s4728_s28, %s4729_s29  }
  0x16   :  { %s4730_s13 = smov [#allocation3]   ;;  %s4655_s17 = scalar_lea.hbm %s4963_s1, 2048 }
  0x17   :  { %s28_s14 = sshll.u32 %s4730_s13, 4  ;;  %p4656_p8 = scmp.ne.s32.totalorder %s4963_s1, %s4655_s17  ;;  %s29_s14 = int_to_ptr.vmem [resolvable:$true] %s28_s14 }
  0x18   :  { %p4659_p9 = scmp.lt.u32.totalorder %s4655_s17, %s4963_s1 }
  0x1a   :  { %p4661_p10 = pnand %p4659_p9, %p4656_p8 }
  0x1c   :  { %4664 = shalt.err (!%p4661_p10)
}
  0x1d   :  { %s4665_s23 = scalar_lea.vmem %s29_s14, 2048  ;;  %p4670_p12 = scmp.lt.s32.totalorder %s29_s14, %s29_s14 }
  0x1e   :  { %p4666_p11 = scmp.ne.s32.totalorder %s29_s14, %s4665_s23  ;;  %p4671_p13 = scmp.lt.s32.totalorder %s4665_s23, %s4665_s23 }
  0x20   :  { %p4672_p0 = por %p4671_p13, %p4670_p12 }
  0x22   :  { %p4673_p1 = pnand %p4672_p0, %p4666_p11 }
  0x24   :  { %4676 = shalt.err (!%p4673_p1)
}
  0x25   :  { %s4731_s3 = smov 128   ;;  %s4732_s20 = smov 8  }
  0x26   :  { %34 = dma.hbm_to_vmem [thread:$0]  %s4963_s1, 2048, %s29_s14, [#allocation4], %s4731_s3, %s4731_s3, %s4732_s20  }
  0x27   :  { %s4733_s26 = smov [#allocation7]   ;;  %s4677_s29 = scalar_lea.hbm %s4967_s5, 32768 }
  0x28   :  { %s56_s27 = sshll.u32 %s4733_s26, 4  ;;  %p4678_p2 = scmp.ne.s32.totalorder %s4967_s5, %s4677_s29  ;;  %s57_s27 = int_to_ptr.vmem [resolvable:$true] %s56_s27 }
  0x29   :  { %p4681_p3 = scmp.lt.u32.totalorder %s4677_s29, %s4967_s5 }
  0x2b   :  { %p4683_p4 = pnand %p4681_p3, %p4678_p2 }
  0x2d   :  { %4686 = shalt.err (!%p4683_p4)
}
  0x2e   :  { %s4687_s16 = scalar_lea.vmem %s57_s27, 32768  ;;  %p4692_p6 = scmp.lt.s32.totalorder %s57_s27, %s57_s27 }
  0x2f   :  { %p4688_p5 = scmp.ne.s32.totalorder %s57_s27, %s4687_s16  ;;  %p4693_p7 = scmp.lt.s32.totalorder %s4687_s16, %s4687_s16 }
  0x31   :  { %p4694_p8 = por %p4693_p7, %p4692_p6 }
  0x33   :  { %p4695_p9 = pnand %p4694_p8, %p4688_p5 }
  0x35   :  { %4698 = shalt.err (!%p4695_p9)
}
  0x36   :  { %s4734_s1 = smov 256   ;;  %s4735_s14 = smov 16  }
  0x37   :  { %62 = dma.hbm_to_vmem [thread:$0]  %s4967_s5, 32768, %s57_s27, [#allocation6], %s4734_s1, %s4734_s1, %s4735_s14  }
  0x38   :  { %s4736_s19 = smov [#allocation8]   ;;  %s4699_s3 = scalar_lea.hbm %s4969_s7, 4096 }
  0x39   :  { %s70_s21 = sshll.u32 %s4736_s19, 4  ;;  %p4700_p10 = scmp.ne.s32.totalorder %s4969_s7, %s4699_s3  ;;  %s71_s21 = int_to_ptr.vmem [resolvable:$true] %s70_s21 }
  0x3a   :  { %p4703_p11 = scmp.lt.u32.totalorder %s4699_s3, %s4969_s7 }
  0x3c   :  { %p4705_p12 = pnand %p4703_p11, %p4700_p10 }
  0x3e   :  { %4708 = shalt.err (!%p4705_p12)
}
  0x3f   :  { %s4709_s10 = scalar_lea.vmem %s71_s21, 4096  ;;  %p4714_p0 = scmp.lt.s32.totalorder %s71_s21, %s71_s21 }
  0x40   :  { %p4710_p13 = scmp.ne.s32.totalorder %s71_s21, %s4709_s10  ;;  %p4715_p1 = scmp.lt.s32.totalorder %s4709_s10, %s4709_s10 }
  0x42   :  { %p4716_p2 = por %p4715_p1, %p4714_p0 }
  0x44   :  { %p4717_p3 = pnand %p4716_p2, %p4710_p13 }
  0x46   :  { %4720 = shalt.err (!%p4717_p3)
}
  0x47   :  { %s4737_s5 = smov 64   ;;  %s4738_s27 = smov 4  }
  0x48   :  { %76 = dma.hbm_to_vmem [thread:$0]  %s4969_s7, 4096, %s71_s21, [#allocation9], %s4737_s5, %s4737_s5, %s4738_s27  }
  0x49   :  { %4721 = dma.done.wait [#allocation4], 2048  }
  0x4a   :  { %4722 = vsyncadd [#allocation4], 4294965248 }
  0x4b   :  { %4723 = dma.done.wait [#allocation6], 49152  }
  0x4c   :  { %4724 = vsyncadd [#allocation6], 4294918144 }
  0x4d   :  { %4725 = dma.done.wait [#allocation9], 4096  }
  0x4e   :  { %4726 = vsyncadd [#allocation9], 4294963200  ;;  %v4739_v1 = vmov 0   ;;  %v4193_v2 = vld [vmem:[#allocation3 + $0x4] ss:$8 sps:$4 sm:$0xff]   ;;  %vm4741_vm0 = vmmov 0  }
  0x4f   :  { %225 = vmatprep.mubr.bf16.mxu0 %v4739_v1  ;;  %4192 = vset.pattern.permute.xlu0 %v4739_v1  ;;  %v4195_v3 = vld [vmem:[#allocation3] ss:$8 sps:$4 sm:$0xff]   ;;  %v4196_v4 = vld [vmem:[#allocation3 + $0x14] ss:$8 sps:$4 sm:$0xff]   ;;  %v4198_v5 = vld [vmem:[#allocation3 + $0x10] ss:$8 sps:$4 sm:$0xff]  }
  0x50   :  { %193 = vmatprep.subr.bf16.mxu0 %v4193_v2  ;;  %v4199_v6 = vld [vmem:[#allocation3 + $0x24] ss:$8 sps:$4 sm:$0xff]   ;;  %v4201_v7 = vld [vmem:[#allocation3 + $0x20] ss:$8 sps:$4 sm:$0xff]   ;;  %v4202_v8 = vld [vmem:[#allocation3 + $0x34] ss:$8 sps:$4 sm:$0xff]  }
  0x51   :  { %194 = vmatpush1.bf16.msra.mxu0 %v4195_v3  ;;  %v4204_v9 = vld [vmem:[#allocation3 + $0x30] ss:$8 sps:$4 sm:$0xff]   ;;  %v268_v10 = vld [vmem:[#allocation5] sm:$0xff]  ;;  %v4208_v22 = vld [vmem:[#allocation3 + $0x54] ss:$8 sps:$4 sm:$0xff]   ;;  %vm3659_vm1 = vcmask 64512  }
  0x52   :  { %195 = vmatprep.subr.bf16.mxu0 %v4196_v4  ;;  %v272_v11 = vld [vmem:[#allocation5 + $0x20] sm:$0xff]  ;;  %v4210_v26 = vld [vmem:[#allocation3 + $0x50] ss:$8 sps:$4 sm:$0xff]   ;;  %v4214_v34 = vld [vmem:[#allocation3 + $0x74] ss:$8 sps:$4 sm:$0xff]  }
  0x53   :  { %v4205_v12 = vld [vmem:[#allocation3 + $0x44] ss:$8 sps:$4 sm:$0xff]   ;;  %v3685_v13 = vcombine.high %v268_v10, %v272_v11  ;;  %v3684_v14 = vcombine.low %v268_v10, %v272_v11  ;;  %v4207_v20 = vld [vmem:[#allocation3 + $0x40] ss:$8 sps:$4 sm:$0xff]   ;;  %v4216_v40 = vld [vmem:[#allocation3 + $0x70] ss:$8 sps:$4 sm:$0xff]  }
  0x54   :  { %v276_v15 = vld [vmem:[#allocation5 + $0x40] sm:$0xff]  ;;  %v269_v35 = vld [vmem:[#allocation5 + $0x8] sm:$0xff] }
  0x55   :  { %196 = vmatpush1.bf16.msra.mxu0 %v4198_v5  ;;  %v280_v16 = vld [vmem:[#allocation5 + $0x60] sm:$0xff]  ;;  %1036 = vmatprep.subr.bf16.mxu1 %v3685_v13  ;;  %v273_v37 = vld [vmem:[#allocation5 + $0x28] sm:$0xff] }
  0x56   :  { %197 = vmatprep.subr.bf16.mxu0 %v4199_v6  ;;  %v3693_v17 = vcombine.high %v276_v15, %v280_v16  ;;  %v284_v18 = vld [vmem:[#allocation5 + $0x80] sm:$0xff]  ;;  %1037 = vmatpush1.bf16.msra.mxu1 %v3684_v14  ;;  %v3692_v21 = vcombine.low %v276_v15, %v280_v16  ;;  %v3687_v42 = vcombine.high %v269_v35, %v273_v37  ;;  %v277_v43 = vld [vmem:[#allocation5 + $0x48] sm:$0xff] }
  0x57   :  { %v288_v19 = vld [vmem:[#allocation5 + $0xa0] sm:$0xff]  ;;  %v281_v44 = vld [vmem:[#allocation5 + $0x68] sm:$0xff]  ;;  %v3686_v49 = vcombine.low %v269_v35, %v273_v37 }
  0x58   :  { %1038 = vmatprep.subr.bf16.mxu1 %v3693_v17  ;;  %v3701_v23 = vcombine.high %v284_v18, %v288_v19  ;;  %v292_v24 = vld [vmem:[#allocation5 + $0xc0] sm:$0xff]  ;;  %v3700_v27 = vcombine.low %v284_v18, %v288_v19  ;;  %v285_v50 = vld [vmem:[#allocation5 + $0x88] sm:$0xff]  ;;  %v3695_v55 = vcombine.high %v277_v43, %v281_v44  ;;  %v3694_v57 = vcombine.low %v277_v43, %v281_v44 }
  0x59   :  { %198 = vmatpush1.bf16.msra.mxu0 %v4201_v7  ;;  %v296_v25 = vld [vmem:[#allocation5 + $0xe0] sm:$0xff]  ;;  %v289_v51 = vld [vmem:[#allocation5 + $0xa8] sm:$0xff] }
  0x5a   :  { %199 = vmatprep.subr.bf16.mxu0 %v4202_v8  ;;  %1039 = vmatpush1.bf16.msra.mxu1 %v3692_v21  ;;  %v4211_v28 = vld [vmem:[#allocation3 + $0x64] ss:$8 sps:$4 sm:$0xff]   ;;  %v3709_v29 = vcombine.high %v292_v24, %v296_v25  ;;  %v4213_v32 = vld [vmem:[#allocation3 + $0x60] ss:$8 sps:$4 sm:$0xff]   ;;  %v3708_v33 = vcombine.low %v292_v24, %v296_v25  ;;  %v3703_v63 = vcombine.high %v285_v50, %v289_v51 }
  0x5b   :  { %1040 = vmatprep.subr.bf16.mxu1 %v3701_v23  ;;  %v300_v30 = vld [vmem:[#allocation5 + $0x100] sm:$0xff]  ;;  %v293_v58 = vld [vmem:[#allocation5 + $0xc8] sm:$0xff]  ;;  %v3702_v2 = vcombine.low %v285_v50, %v289_v51 }
  0x5c   :  { %v304_v31 = vld [vmem:[#allocation5 + $0x120] sm:$0xff]  ;;  %v297_v59 = vld [vmem:[#allocation5 + $0xe8] sm:$0xff] }
  0x5d   :  { %200 = vmatpush1.bf16.msra.mxu0 %v4204_v9  ;;  %v3717_v36 = vcombine.high %v300_v30, %v304_v31  ;;  %v308_v38 = vld [vmem:[#allocation5 + $0x140] sm:$0xff]  ;;  %v3716_v41 = vcombine.low %v300_v30, %v304_v31  ;;  %v301_v3 = vld [vmem:[#allocation5 + $0x108] sm:$0xff]  ;;  %v3711_v8 = vcombine.high %v293_v58, %v297_v59  ;;  %v3710_v10 = vcombine.low %v293_v58, %v297_v59 }
  0x5e   :  { %201 = vmatprep.subr.bf16.mxu0 %v4205_v12  ;;  %1041 = vmatpush1.bf16.msra.mxu1 %v3700_v27  ;;  %v312_v39 = vld [vmem:[#allocation5 + $0x160] sm:$0xff]  ;;  %v305_v4 = vld [vmem:[#allocation5 + $0x128] sm:$0xff] }
  0x5f   :  { %1042 = vmatprep.subr.bf16.mxu1 %v3709_v29  ;;  %v3725_v45 = vcombine.high %v308_v38, %v312_v39  ;;  %v96_v46 = vld [vmem:[%s4962_s0] sm:$0xf]  ;;  %v3724_v52 = vcombine.low %v308_v38, %v312_v39  ;;  %v309_v11 = vld [vmem:[#allocation5 + $0x148] sm:$0xff]  ;;  %v3719_v16 = vcombine.high %v301_v3, %v305_v4  ;;  %v3718_v18 = vcombine.low %v301_v3, %v305_v4 }
  0x60   :  { %v316_v47 = vld [vmem:[#allocation5 + $0x180] sm:$0xff]  ;;  %v313_v12 = vld [vmem:[#allocation5 + $0x168] sm:$0xff] }
  0x61   :  { %202 = vmatpush1.bf16.msra.mxu0 %v4207_v20  ;;  %v320_v48 = vld [vmem:[#allocation5 + $0x1a0] sm:$0xff]  ;;  %v317_v19 = vld [vmem:[#allocation5 + $0x188] sm:$0xff]  ;;  %v3727_v24 = vcombine.high %v309_v11, %v313_v12 }
  0x62   :  { %203 = vmatprep.subr.bf16.mxu0 %v4208_v22  ;;  %1043 = vmatpush1.bf16.msra.mxu1 %v3708_v33  ;;  %v324_v53 = vld [vmem:[#allocation5 + $0x1c0] sm:$0xff]  ;;  %v3733_v56 = vcombine.high %v316_v47, %v320_v48  ;;  %v3732_v60 = vcombine.low %v316_v47, %v320_v48  ;;  %v321_v20 = vld [vmem:[#allocation5 + $0x1a8] sm:$0xff] }
  0x63   :  { %1044 = vmatprep.subr.bf16.mxu1 %v3717_v36  ;;  %v328_v54 = vld [vmem:[#allocation5 + $0x1e0] sm:$0xff]  ;;  %v325_v27 = vld [vmem:[#allocation5 + $0x1c8] sm:$0xff] }
  0x64   :  { %v332_v61 = vld [vmem:[#allocation5 + $0x200] sm:$0xff]  ;;  %v3741_v0 = vcombine.high %v324_v53, %v328_v54  ;;  %v3740_v5 = vcombine.low %v324_v53, %v328_v54  ;;  %v333_v35 = vld [vmem:[#allocation5 + $0x208] sm:$0xff] }
  0x65   :  { %204 = vmatpush1.bf16.msra.mxu0 %v4210_v26  ;;  %v336_v62 = vld [vmem:[#allocation5 + $0x220] sm:$0xff]  ;;  %v3726_v26 = vcombine.low %v309_v11, %v313_v12  ;;  %v337_v36 = vld [vmem:[#allocation5 + $0x228] sm:$0xff] }
  0x66   :  { %205 = vmatprep.subr.bf16.mxu0 %v4211_v28  ;;  %1045 = vmatpush1.bf16.msra.mxu1 %v3716_v41  ;;  %v340_v6 = vld [vmem:[#allocation5 + $0x240] sm:$0xff]  ;;  %v3749_v9 = vcombine.high %v332_v61, %v336_v62  ;;  %v3748_v13 = vcombine.low %v332_v61, %v336_v62  ;;  %v329_v28 = vld [vmem:[#allocation5 + $0x1e8] sm:$0xff]  ;;  %v3750_v48 = vcombine.low %v333_v35, %v337_v36 }
  0x67   :  { %1046 = vmatprep.subr.bf16.mxu1 %v3725_v45  ;;  %v344_v7 = vld [vmem:[#allocation5 + $0x260] sm:$0xff]  ;;  %v341_v43 = vld [vmem:[#allocation5 + $0x248] sm:$0xff] }
  0x68   :  { %v348_v14 = vld [vmem:[#allocation5 + $0x280] sm:$0xff]  ;;  %v3757_v17 = vcombine.high %v340_v6, %v344_v7  ;;  %v3756_v21 = vcombine.low %v340_v6, %v344_v7  ;;  %v345_v44 = vld [vmem:[#allocation5 + $0x268] sm:$0xff] }
  0x69   :  { %206 = vmatpush1.bf16.msra.mxu0 %v4213_v32  ;;  %v352_v15 = vld [vmem:[#allocation5 + $0x2a0] sm:$0xff]  ;;  %v3735_v32 = vcombine.high %v317_v19, %v321_v20  ;;  %v353_v50 = vld [vmem:[#allocation5 + $0x2a8] sm:$0xff]  ;;  %v3758_v53 = vcombine.low %v341_v43, %v345_v44 }
  0x6a   :  { %207 = vmatprep.subr.bf16.mxu0 %v4214_v34  ;;  %1047 = vmatpush1.bf16.msra.mxu1 %v3724_v52  ;;  %v356_v22 = vld [vmem:[#allocation5 + $0x2c0] sm:$0xff]  ;;  %v3765_v25 = vcombine.high %v348_v14, %v352_v15  ;;  %v3764_v29 = vcombine.low %v348_v14, %v352_v15  ;;  %v3734_v34 = vcombine.low %v317_v19, %v321_v20  ;;  %v357_v54 = vld [vmem:[#allocation5 + $0x2c8] sm:$0xff] }
  0x6b   :  { %1048 = vmatprep.subr.bf16.mxu1 %v3733_v56  ;;  %v360_v23 = vld [vmem:[#allocation5 + $0x2e0] sm:$0xff]  ;;  %v3759_v52 = vcombine.high %v341_v43, %v345_v44  ;;  %v365_v58 = vld [vmem:[#allocation5 + $0x308] sm:$0xff] }
  0x6c   :  { %v364_v30 = vld [vmem:[#allocation5 + $0x300] sm:$0xff]  ;;  %v3773_v33 = vcombine.high %v356_v22, %v360_v23  ;;  %v3772_v37 = vcombine.low %v356_v22, %v360_v23  ;;  %v369_v59 = vld [vmem:[#allocation5 + $0x328] sm:$0xff]  ;;  %v274_v22 = vld [vmem:[#allocation5 + $0x30] sm:$0xff] }
  0x6d   :  { %208 = vmatpush1.bf16.msra.mxu0 %v4216_v40  ;;  %v368_v31 = vld [vmem:[#allocation5 + $0x320] sm:$0xff]  ;;  %v3743_v40 = vcombine.high %v325_v27, %v329_v28  ;;  %v373_v62 = vld [vmem:[#allocation5 + $0x348] sm:$0xff]  ;;  %v271_v23 = vld [vmem:[#allocation5 + $0x18] sm:$0xff] }
  0x6e   :  { %1077 = vmatprep.subr.bf16.mxu0 %v3687_v42  ;;  %1049 = vmatpush1.bf16.msra.mxu1 %v3732_v60  ;;  %v372_v38 = vld [vmem:[#allocation5 + $0x340] sm:$0xff]  ;;  %v3781_v41 = vcombine.high %v364_v30, %v368_v31  ;;  %v3742_v42 = vcombine.low %v325_v27, %v329_v28  ;;  %v3780_v45 = vcombine.low %v364_v30, %v368_v31  ;;  %v381_v7 = vld [vmem:[#allocation5 + $0x388] sm:$0xff] }
  0x6f   :  { %1050 = vmatprep.subr.bf16.mxu1 %v3741_v0  ;;  %v376_v39 = vld [vmem:[#allocation5 + $0x360] sm:$0xff]  ;;  %v3783_v0 = vcombine.high %v365_v58, %v369_v59  ;;  %v389_v15 = vld [vmem:[#allocation5 + $0x3c8] sm:$0xff] }
  0x70   :  { %226 = vmatmul.mubr.bf16.vlgmr.msra.gmra.mrb[0].mxu0 %v96_v46  ;;  %v3751_v46 = vcombine.high %v333_v35, %v337_v36  ;;  %v3789_v47 = vcombine.high %v372_v38, %v376_v39  ;;  %v3788_v51 = vcombine.low %v372_v38, %v376_v39  ;;  %v384_v6 = vld [vmem:[#allocation5 + $0x3a0] sm:$0xff] }
  0x71   :  { %1078 = vmatpush1.bf16.msra.mxu0 %v3686_v49  ;;  %v349_v49 = vld [vmem:[#allocation5 + $0x288] sm:$0xff]  ;;  %v392_v14 = vld [vmem:[#allocation5 + $0x3e0] sm:$0xff] }
  0x72   :  { %1079 = vmatprep.subr.bf16.mxu0 %v3695_v55  ;;  %1051 = vmatpush1.bf16.msra.mxu1 %v3740_v5  ;;  %v361_v55 = vld [vmem:[#allocation5 + $0x2e8] sm:$0xff]  ;;  %v3767_v56 = vcombine.high %v349_v49, %v353_v50  ;;  %v380_v5 = vld [vmem:[#allocation5 + $0x380] sm:$0xff] }
  0x73   :  { %1052 = vmatprep.subr.bf16.mxu1 %v3749_v9  ;;  %v3775_v60 = vcombine.high %v357_v54, %v361_v55  ;;  %v3774_v61 = vcombine.low %v357_v54, %v361_v55  ;;  %v385_v9 = vld [vmem:[#allocation5 + $0x3a8] sm:$0xff]  ;;  %v3796_v12 = vcombine.low %v380_v5, %v384_v6 }
  0x74   :  { %v3799_v11 = vcombine.high %v381_v7, %v385_v9 }
  0x75   :  { %1080 = vmatpush1.bf16.msra.mxu0 %v3694_v57  ;;  %v3766_v57 = vcombine.low %v349_v49, %v353_v50  ;;  %v278_v50 = vld [vmem:[#allocation5 + $0x50] sm:$0xff] }
  0x76   :  { %1081 = vmatprep.subr.bf16.mxu0 %v3703_v63  ;;  %1053 = vmatpush1.bf16.msra.mxu1 %v3748_v13  ;;  %v377_v63 = vld [vmem:[#allocation5 + $0x368] sm:$0xff]  ;;  %v388_v13 = vld [vmem:[#allocation5 + $0x3c0] sm:$0xff] }
  0x77   :  { %1054 = vmatprep.subr.bf16.mxu1 %v3757_v17  ;;  %v3791_v3 = vcombine.high %v373_v62, %v377_v63  ;;  %v3790_v4 = vcombine.low %v373_v62, %v377_v63  ;;  %v393_v17 = vld [vmem:[#allocation5 + $0x3e8] sm:$0xff]  ;;  %v3804_v20 = vcombine.low %v388_v13, %v392_v14 }
  0x78   :  { %v3807_v19 = vcombine.high %v389_v15, %v393_v17 }
  0x79   :  { %1082 = vmatpush1.bf16.msra.mxu0 %v3702_v2  ;;  %v3782_v2 = vcombine.low %v365_v58, %v369_v59  ;;  %v290_v59 = vld [vmem:[#allocation5 + $0xb0] sm:$0xff] }
  0x7a   :  { %1083 = vmatprep.subr.bf16.mxu0 %v3711_v8  ;;  %1055 = vmatpush1.bf16.msra.mxu1 %v3756_v21  ;;  %v3797_v8 = vcombine.high %v380_v5, %v384_v6  ;;  %v270_v21 = vld [vmem:[#allocation5 + $0x10] sm:$0xff]  ;;  %v295_v5 = vld [vmem:[#allocation5 + $0xd8] sm:$0xff] }
  0x7b   :  { %1056 = vmatprep.subr.bf16.mxu1 %v3765_v25  ;;  %v275_v25 = vld [vmem:[#allocation5 + $0x38] sm:$0xff] }
  0x7c   :  { %v3690_v27 = vcombine.low %v271_v23, %v275_v25  ;;  %v3691_v28 = vcombine.high %v271_v23, %v275_v25  ;;  %v299_v6 = vld [vmem:[#allocation5 + $0xf8] sm:$0xff] }
  0x7d   :  { %1084 = vmatpush1.bf16.msra.mxu0 %v3710_v10  ;;  %v3798_v10 = vcombine.low %v381_v7, %v385_v9 }
  0x7e   :  { %1085 = vmatprep.subr.bf16.mxu0 %v3719_v16  ;;  %1057 = vmatpush1.bf16.msra.mxu1 %v3764_v29  ;;  %v3805_v16 = vcombine.high %v388_v13, %v392_v14  ;;  %v238_v29 = vlaneseq  ;;  %v303_v13 = vld [vmem:[#allocation5 + $0x118] sm:$0xff] }
  0x7f   :  { %1058 = vmatprep.subr.bf16.mxu1 %v3773_v33  ;;  %v307_v14 = vld [vmem:[#allocation5 + $0x138] sm:$0xff] }
  0x80   :  { %v4858_v30 = vshrl.u32 %v238_v29, 7  ;;  %v319_v29 = vld [vmem:[#allocation5 + $0x198] sm:$0xff] }
  0x81   :  { %1086 = vmatpush1.bf16.msra.mxu0 %v3718_v18  ;;  %v3806_v18 = vcombine.low %v389_v15, %v393_v17 }
  0x82   :  { %1087 = vmatprep.subr.bf16.mxu0 %v3727_v24  ;;  %1059 = vmatpush1.bf16.msra.mxu1 %v3772_v37  ;;  %v3689_v24 = vcombine.high %v270_v21, %v274_v22  ;;  %v4861_v31 = vsub.s32 0, %v4858_v30  ;;  %v4867_v33 = vsub.s32 1, %v4858_v30 }
  0x83   :  { %1060 = vmatprep.subr.bf16.mxu1 %v3781_v41 }
  0x85   :  { %1088 = vmatpush1.bf16.msra.mxu0 %v3726_v26  ;;  %v3688_v26 = vcombine.low %v270_v21, %v274_v22  ;;  %v311_v21 = vld [vmem:[#allocation5 + $0x158] sm:$0xff] }
  0x86   :  { %1089 = vmatprep.subr.bf16.mxu0 %v3735_v32  ;;  %1061 = vmatpush1.bf16.msra.mxu1 %v3780_v45  ;;  %v236_v32 = vld [vmem:[%s4964_s2] sm:$0x3] }
  0x87   :  { %1062 = vmatprep.subr.bf16.mxu1 %v3789_v47  ;;  %v245_v35 = vrot.slane %v236_v32, %v4867_v33  ;;  %v315_v22 = vld [vmem:[#allocation5 + $0x178] sm:$0xff] }
  0x89   :  { %1090 = vmatpush1.bf16.msra.mxu0 %v3734_v34  ;;  %v241_v34 = vrot.slane %v236_v32, %v4861_v31  ;;  %v249_v37 = vpack.c.bf16 %v245_v35, %v245_v35  ;;  %v323_v32 = vld [vmem:[#allocation5 + $0x1b8] sm:$0xff]  ;;  %v3730_v35 = vcombine.low %v311_v21, %v315_v22 }
  0x8a   :  { %1091 = vmatprep.subr.bf16.mxu0 %v3743_v40  ;;  %1063 = vmatpush1.bf16.msra.mxu1 %v3788_v51  ;;  %v282_v51 = vld [vmem:[#allocation5 + $0x70] sm:$0xff] }
  0x8b   :  { %1064 = vmatprep.subr.bf16.mxu1 %v3797_v8  ;;  %v248_v36 = vpack.c.bf16 %v241_v34, %v241_v34  ;;  %v258_v39 = vpack.i.b16 %v249_v37, %v249_v37  ;;  %v3696_v62 = vcombine.low %v278_v50, %v282_v51  ;;  %v3739_v37 = vcombine.high %v319_v29, %v323_v32 }
  0x8d   :  { %1092 = vmatpush1.bf16.msra.mxu0 %v3742_v42  ;;  %v251_v38 = vpack.i.b16 %v248_v36, %v248_v36  ;;  %v263_v42 = vrot.slane %v258_v39, %v4861_v31  ;;  %v330_v39 = vld [vmem:[#allocation5 + $0x1f0] sm:$0xff] }
  0x8e   :  { %1093 = vmatprep.subr.bf16.mxu0 %v3751_v46  ;;  %1065 = vmatpush1.bf16.msra.mxu1 %v3796_v12  ;;  %v306_v12 = vld [vmem:[#allocation5 + $0x130] sm:$0xff] }
  0x8f   :  { %1066 = vmatprep.subr.bf16.mxu1 %v3805_v16  ;;  %v256_v40 = vrot.slane %v251_v38, %v4861_v31  ;;  %v3714_v16 = vcombine.low %v295_v5, %v299_v6  ;;  %v326_v38 = vld [vmem:[#allocation5 + $0x1d0] sm:$0xff] }
  0x91   :  { %1094 = vmatpush1.bf16.msra.mxu0 %v3750_v48 }
  0x92   :  { %1095 = vmatprep.subr.bf16.mxu0 %v3759_v52  ;;  %1067 = vmatpush1.bf16.msra.mxu1 %v3804_v20  ;;  %v279_v52 = vld [vmem:[#allocation5 + $0x58] sm:$0xff]  ;;  %v314_v20 = vld [vmem:[#allocation5 + $0x170] sm:$0xff] }
  0x93   :  { %1118 = vmatprep.subr.bf16.mxu1 %v3689_v24  ;;  %v3722_v24 = vcombine.low %v303_v13, %v307_v14 }
  0x95   :  { %1096 = vmatpush1.bf16.msra.mxu0 %v3758_v53  ;;  %v283_v53 = vld [vmem:[#allocation5 + $0x78] sm:$0xff] }
  0x96   :  { %1097 = vmatprep.subr.bf16.mxu0 %v3767_v56  ;;  %v286_v56 = vld [vmem:[#allocation5 + $0x90] sm:$0xff]  ;;  %v3699_v58 = vcombine.high %v279_v52, %v283_v53  ;;  %v3698_v63 = vcombine.low %v279_v52, %v283_v53 }
  0x97   :  { %v3704_v7 = vcombine.low %v286_v56, %v290_v59 }
  0x99   :  { %1098 = vmatpush1.bf16.msra.mxu0 %v3766_v57  ;;  %v3697_v57 = vcombine.high %v278_v50, %v282_v51  ;;  %v3744_v50 = vcombine.low %v326_v38, %v330_v39 }
  0x9a   :  { %1099 = vmatprep.subr.bf16.mxu0 %v3775_v60  ;;  %v287_v60 = vld [vmem:[#allocation5 + $0x98] sm:$0xff] }
  0x9d   :  { %1100 = vmatpush1.bf16.msra.mxu0 %v3774_v61  ;;  %v291_v61 = vld [vmem:[#allocation5 + $0xb8] sm:$0xff] }
  0x9e   :  { %1101 = vmatprep.subr.bf16.mxu0 %v3783_v0  ;;  %v3705_v0 = vcombine.high %v286_v56, %v290_v59  ;;  %v3706_v8 = vcombine.low %v287_v60, %v291_v61  ;;  %v346_v56 = vld [vmem:[#allocation5 + $0x270] sm:$0xff] }
  0xa1   :  { %1102 = vmatpush1.bf16.msra.mxu0 %v3782_v2  ;;  %v3707_v2 = vcombine.high %v287_v60, %v291_v61 }
  0xa2   :  { %1103 = vmatprep.subr.bf16.mxu0 %v3791_v3  ;;  %v294_v3 = vld [vmem:[#allocation5 + $0xd0] sm:$0xff] }
  0xa5   :  { %1104 = vmatpush1.bf16.msra.mxu0 %v3790_v4  ;;  %v298_v4 = vld [vmem:[#allocation5 + $0xf0] sm:$0xff] }
  0xa6   :  { %1105 = vmatprep.subr.bf16.mxu0 %v3799_v11  ;;  %v3713_v9 = vcombine.high %v294_v3, %v298_v4  ;;  %v302_v11 = vld [vmem:[#allocation5 + $0x110] sm:$0xff]  ;;  %v3712_v15 = vcombine.low %v294_v3, %v298_v4  ;;  %v355_v3 = vld [vmem:[#allocation5 + $0x2b8] sm:$0xff] }
  0xa7   :  { %v3721_v17 = vcombine.high %v302_v11, %v306_v12  ;;  %v3720_v23 = vcombine.low %v302_v11, %v306_v12  ;;  %v363_v11 = vld [vmem:[#allocation5 + $0x2f8] sm:$0xff] }
  0xa9   :  { %1106 = vmatpush1.bf16.msra.mxu0 %v3798_v10  ;;  %v3715_v10 = vcombine.high %v295_v5, %v299_v6 }
  0xaa   :  { %1107 = vmatprep.subr.bf16.mxu0 %v3807_v19  ;;  %v310_v19 = vld [vmem:[#allocation5 + $0x150] sm:$0xff] }
  0xab   :  { %v3729_v25 = vcombine.high %v310_v19, %v314_v20  ;;  %v3728_v34 = vcombine.low %v310_v19, %v314_v20  ;;  %v371_v19 = vld [vmem:[#allocation5 + $0x338] sm:$0xff] }
  0xad   :  { %1108 = vmatpush1.bf16.msra.mxu0 %v3806_v18  ;;  %v3723_v18 = vcombine.high %v303_v13, %v307_v14 }
  0xae   :  { %1159 = vmatprep.subr.bf16.mxu0 %v3691_v28  ;;  %v322_v28 = vld [vmem:[#allocation5 + $0x1b0] sm:$0xff] }
 0x143   :  { %v227_v41 = vpop.f32.mrb[0].mxu0 }
 0x144   :  { %v234_v43 = vpack.c.bf16 %v227_v41, %v227_v41  ;;  %v229_v44 = vpop.f32.mrb[1].mxu0  ;;  %v331_v41 = vld [vmem:[#allocation5 + $0x1f8] sm:$0xff] }
 0x145   :  { %v235_v45 = vpack.c.bf16 %v229_v44, %v229_v44  ;;  %v231_v46 = vpop.f32.mrb[2].mxu0  ;;  %v3745_v44 = vcombine.high %v326_v38, %v330_v39  ;;  %v387_v38 = vld [vmem:[#allocation5 + $0x3b8] sm:$0xff] }
 0x146   :  { %v264_v47 = vadd.bf16 %v256_v40, %v234_v43  ;;  %v232_v48 = vpop.f32.mrb[3].mxu0  ;;  %v327_v40 = vld [vmem:[#allocation5 + $0x1d8] sm:$0xff]  ;;  %v3738_v43 = vcombine.low %v319_v29, %v323_v32  ;;  %v334_v46 = vld [vmem:[#allocation5 + $0x210] sm:$0xff] }
 0x147   :  { %v265_v49 = vadd.bf16 %v263_v42, %v235_v45  ;;  %v3747_v45 = vcombine.high %v327_v40, %v331_v41  ;;  %v335_v48 = vld [vmem:[#allocation5 + $0x218] sm:$0xff]  ;;  %v3746_v51 = vcombine.low %v327_v40, %v331_v41 }
 0x148   :  { %v4875_v55 = vmax.bf16 %v4739_v1, %v264_v47  ;;  %v338_v47 = vld [vmem:[#allocation5 + $0x230] sm:$0xff] }
 0x149   :  { %v267_v54 = vmax.bf16 %v4739_v1, %v265_v49  ;;  %v339_v49 = vld [vmem:[#allocation5 + $0x238] sm:$0xff]  ;;  %v3753_v52 = vcombine.high %v334_v46, %v338_v47  ;;  %v3752_v59 = vcombine.low %v334_v46, %v338_v47 }
 0x14a   :  { %v3755_v53 = vcombine.high %v335_v48, %v339_v49  ;;  %v3754_v60 = vcombine.low %v335_v48, %v339_v49  ;;  %v395_v46 = vld [vmem:[#allocation5 + $0x3f8] sm:$0xff] }
 0x14b   :  { %1068 = vmatprep.mubr.bf16.mxu1 %v267_v54  ;;  %1109 = vmatprep.mubr.bf16.mxu0 %v267_v54 }
 0x14c   :  { %1069 = vmatmul.mubr.bf16.vlgmr.msra.gmra.mrb[0].mxu1 %v4875_v55  ;;  %1110 = vmatmul.mubr.bf16.vlgmr.msra.gmra.mrb[4].mxu0 %v4875_v55 }
 0x14d   :  { %1119 = vmatpush1.bf16.msra.mxu1 %v3688_v26  ;;  %1160 = vmatpush1.bf16.msra.mxu0 %v3690_v27  ;;  %v3731_v26 = vcombine.high %v311_v21, %v315_v22  ;;  %v318_v27 = vld [vmem:[#allocation5 + $0x190] sm:$0xff] }
 0x14e   :  { %1150 = vmatprep.mubr.bf16.mxu1 %v267_v54  ;;  %1191 = vmatprep.mubr.bf16.mxu0 %v267_v54  ;;  %v3737_v36 = vcombine.high %v318_v27, %v322_v28  ;;  %v3736_v42 = vcombine.low %v318_v27, %v322_v28  ;;  %v342_v54 = vld [vmem:[#allocation5 + $0x250] sm:$0xff]  ;;  %v379_v27 = vld [vmem:[#allocation5 + $0x378] sm:$0xff] }
 0x14f   :  { %1120 = vmatprep.subr.bf16.mxu1 %v3697_v57  ;;  %1161 = vmatprep.subr.bf16.mxu0 %v3699_v58  ;;  %v343_v57 = vld [vmem:[#allocation5 + $0x258] sm:$0xff]  ;;  %v3761_v61 = vcombine.high %v342_v54, %v346_v56  ;;  %v3760_v4 = vcombine.low %v342_v54, %v346_v56  ;;  %v4217_v56 = vld [vmem:[#allocation7] ss:$16 sps:$4 sm:$0xff]  }
 0x150   :  { %v347_v58 = vld [vmem:[#allocation5 + $0x278] sm:$0xff] }
 0x151   :  { %1121 = vmatpush1.bf16.msra.mxu1 %v3696_v62  ;;  %1162 = vmatpush1.bf16.msra.mxu0 %v3698_v63  ;;  %v3763_v62 = vcombine.high %v343_v57, %v347_v58  ;;  %v350_v63 = vld [vmem:[#allocation5 + $0x290] sm:$0xff]  ;;  %v3762_v5 = vcombine.low %v343_v57, %v347_v58  ;;  %v4222_v54 = vld [vmem:[#allocation7 + $0xc] ss:$16 sps:$4 sm:$0xff]   ;;  %v4220_v57 = vld [vmem:[#allocation7 + $0x8] ss:$16 sps:$4 sm:$0xff]  }
 0x152   :  { %1122 = vmatprep.subr.bf16.mxu1 %v3705_v0  ;;  %1163 = vmatprep.subr.bf16.mxu0 %v3707_v2  ;;  %v354_v0 = vld [vmem:[#allocation5 + $0x2b0] sm:$0xff]  ;;  %v351_v2 = vld [vmem:[#allocation5 + $0x298] sm:$0xff] }
 0x153   :  { %v3769_v6 = vcombine.high %v350_v63, %v354_v0  ;;  %v3768_v12 = vcombine.low %v350_v63, %v354_v0  ;;  %v3770_v13 = vcombine.low %v351_v2, %v355_v3  ;;  %v4225_v58 = vld [vmem:[#allocation7 + $0x24] ss:$16 sps:$4 sm:$0xff]   ;;  %v4234_v63 = vld [vmem:[#allocation7 + $0x4c] ss:$16 sps:$4 sm:$0xff]   ;;  %v4229_v0 = vld [vmem:[#allocation7 + $0x40] ss:$16 sps:$4 sm:$0xff]  }
 0x155   :  { %1123 = vmatpush1.bf16.msra.mxu1 %v3704_v7  ;;  %1164 = vmatpush1.bf16.msra.mxu0 %v3706_v8  ;;  %v3771_v7 = vcombine.high %v351_v2, %v355_v3  ;;  %v358_v8 = vld [vmem:[#allocation5 + $0x2d0] sm:$0xff]  ;;  %v4232_v2 = vld [vmem:[#allocation7 + $0x48] ss:$16 sps:$4 sm:$0xff]  }
 0x156   :  { %1124 = vmatprep.subr.bf16.mxu1 %v3713_v9  ;;  %1165 = vmatprep.subr.bf16.mxu0 %v3715_v10  ;;  %v362_v9 = vld [vmem:[#allocation5 + $0x2f0] sm:$0xff]  ;;  %v359_v10 = vld [vmem:[#allocation5 + $0x2d8] sm:$0xff] }
 0x157   :  { %v3777_v14 = vcombine.high %v358_v8, %v362_v9  ;;  %v3776_v20 = vcombine.low %v358_v8, %v362_v9  ;;  %v3778_v21 = vcombine.low %v359_v10, %v363_v11  ;;  %v4237_v3 = vld [vmem:[#allocation7 + $0x64] ss:$16 sps:$4 sm:$0xff]   ;;  %v4241_v8 = vld [vmem:[#allocation7 + $0x80] ss:$16 sps:$4 sm:$0xff]   ;;  %v4244_v9 = vld [vmem:[#allocation7 + $0x88] ss:$16 sps:$4 sm:$0xff]  }
 0x159   :  { %1125 = vmatpush1.bf16.msra.mxu1 %v3712_v15  ;;  %1166 = vmatpush1.bf16.msra.mxu0 %v3714_v16  ;;  %v3779_v15 = vcombine.high %v359_v10, %v363_v11  ;;  %v366_v16 = vld [vmem:[#allocation5 + $0x310] sm:$0xff]  ;;  %v4252_v11 = vld [vmem:[#allocation7 + $0xac] ss:$16 sps:$4 sm:$0xff]  }
 0x15a   :  { %1126 = vmatprep.subr.bf16.mxu1 %v3721_v17  ;;  %1167 = vmatprep.subr.bf16.mxu0 %v3723_v18  ;;  %v370_v17 = vld [vmem:[#allocation5 + $0x330] sm:$0xff]  ;;  %v367_v18 = vld [vmem:[#allocation5 + $0x318] sm:$0xff] }
 0x15b   :  { %v3785_v22 = vcombine.high %v366_v16, %v370_v17  ;;  %v3784_v28 = vcombine.low %v366_v16, %v370_v17  ;;  %v3786_v29 = vcombine.low %v367_v18, %v371_v19  ;;  %v4249_v10 = vld [vmem:[#allocation7 + $0xa4] ss:$16 sps:$4 sm:$0xff]   ;;  %v4253_v16 = vld [vmem:[#allocation7 + $0xc0] ss:$16 sps:$4 sm:$0xff]   ;;  %v4256_v17 = vld [vmem:[#allocation7 + $0xc8] ss:$16 sps:$4 sm:$0xff]  }
 0x15d   :  { %1127 = vmatpush1.bf16.msra.mxu1 %v3720_v23  ;;  %1168 = vmatpush1.bf16.msra.mxu0 %v3722_v24  ;;  %v3787_v23 = vcombine.high %v367_v18, %v371_v19  ;;  %v374_v24 = vld [vmem:[#allocation5 + $0x350] sm:$0xff]  ;;  %v4264_v19 = vld [vmem:[#allocation7 + $0xec] ss:$16 sps:$4 sm:$0xff]  }
 0x15e   :  { %1128 = vmatprep.subr.bf16.mxu1 %v3729_v25  ;;  %1169 = vmatprep.subr.bf16.mxu0 %v3731_v26  ;;  %v378_v25 = vld [vmem:[#allocation5 + $0x370] sm:$0xff]  ;;  %v375_v26 = vld [vmem:[#allocation5 + $0x358] sm:$0xff] }
 0x15f   :  { %v3793_v32 = vcombine.high %v374_v24, %v378_v25  ;;  %v3792_v39 = vcombine.low %v374_v24, %v378_v25  ;;  %v3794_v40 = vcombine.low %v375_v26, %v379_v27  ;;  %v4261_v18 = vld [vmem:[#allocation7 + $0xe4] ss:$16 sps:$4 sm:$0xff]   ;;  %v4265_v24 = vld [vmem:[#allocation7 + $0x100] ss:$16 sps:$4 sm:$0xff]   ;;  %v4268_v25 = vld [vmem:[#allocation7 + $0x108] ss:$16 sps:$4 sm:$0xff]  }
 0x161   :  { %1129 = vmatpush1.bf16.msra.mxu1 %v3728_v34  ;;  %1170 = vmatpush1.bf16.msra.mxu0 %v3730_v35  ;;  %v3795_v34 = vcombine.high %v375_v26, %v379_v27  ;;  %v382_v35 = vld [vmem:[#allocation5 + $0x390] sm:$0xff]  ;;  %v4276_v27 = vld [vmem:[#allocation7 + $0x12c] ss:$16 sps:$4 sm:$0xff]  }
 0x162   :  { %1130 = vmatprep.subr.bf16.mxu1 %v3737_v36  ;;  %1171 = vmatprep.subr.bf16.mxu0 %v3739_v37  ;;  %v386_v36 = vld [vmem:[#allocation5 + $0x3b0] sm:$0xff]  ;;  %v383_v37 = vld [vmem:[#allocation5 + $0x398] sm:$0xff] }
 0x163   :  { %v3801_v41 = vcombine.high %v382_v35, %v386_v36  ;;  %v3800_v47 = vcombine.low %v382_v35, %v386_v36  ;;  %v3802_v48 = vcombine.low %v383_v37, %v387_v38  ;;  %v4273_v26 = vld [vmem:[#allocation7 + $0x124] ss:$16 sps:$4 sm:$0xff]   ;;  %v4277_v35 = vld [vmem:[#allocation7 + $0x140] ss:$16 sps:$4 sm:$0xff]   ;;  %v4280_v36 = vld [vmem:[#allocation7 + $0x148] ss:$16 sps:$4 sm:$0xff]  }
 0x165   :  { %1131 = vmatpush1.bf16.msra.mxu1 %v3736_v42  ;;  %1172 = vmatpush1.bf16.msra.mxu0 %v3738_v43  ;;  %v3803_v42 = vcombine.high %v383_v37, %v387_v38  ;;  %v390_v43 = vld [vmem:[#allocation5 + $0x3d0] sm:$0xff]  ;;  %v4288_v38 = vld [vmem:[#allocation7 + $0x16c] ss:$16 sps:$4 sm:$0xff]  }
 0x166   :  { %1132 = vmatprep.subr.bf16.mxu1 %v3745_v44  ;;  %1173 = vmatprep.subr.bf16.mxu0 %v3747_v45  ;;  %v394_v44 = vld [vmem:[#allocation5 + $0x3f0] sm:$0xff]  ;;  %v391_v45 = vld [vmem:[#allocation5 + $0x3d8] sm:$0xff] }
 0x167   :  { %v3809_v49 = vcombine.high %v390_v43, %v394_v44  ;;  %v4285_v37 = vld [vmem:[#allocation7 + $0x164] ss:$16 sps:$4 sm:$0xff]  }
 0x169   :  { %1133 = vmatpush1.bf16.msra.mxu1 %v3744_v50  ;;  %1174 = vmatpush1.bf16.msra.mxu0 %v3746_v51  ;;  %v3811_v50 = vcombine.high %v391_v45, %v395_v46  ;;  %v3808_v51 = vcombine.low %v390_v43, %v394_v44  ;;  %v4289_v43 = vld [vmem:[#allocation7 + $0x180] ss:$16 sps:$4 sm:$0xff]   ;;  %v4292_v44 = vld [vmem:[#allocation7 + $0x188] ss:$16 sps:$4 sm:$0xff]  }
 0x16a   :  { %1134 = vmatprep.subr.bf16.mxu1 %v3753_v52  ;;  %1175 = vmatprep.subr.bf16.mxu0 %v3755_v53  ;;  %v3810_v52 = vcombine.low %v391_v45, %v395_v46  ;;  %v4219_v53 = vld [vmem:[#allocation7 + $0x4] ss:$16 sps:$4 sm:$0xff]   ;;  %v4300_v46 = vld [vmem:[#allocation7 + $0x1ac] ss:$16 sps:$4 sm:$0xff]  }
 0x16b   :  { %v4297_v45 = vld [vmem:[#allocation7 + $0x1a4] ss:$16 sps:$4 sm:$0xff]  }
 0x16d   :  { %1135 = vmatpush1.bf16.msra.mxu1 %v3752_v59  ;;  %1176 = vmatpush1.bf16.msra.mxu0 %v3754_v60  ;;  %v4228_v59 = vld [vmem:[#allocation7 + $0x2c] ss:$16 sps:$4 sm:$0xff]   ;;  %v4223_v60 = vld [vmem:[#allocation7 + $0x20] ss:$16 sps:$4 sm:$0xff]  }
 0x16e   :  { %1136 = vmatprep.subr.bf16.mxu1 %v3761_v61  ;;  %1177 = vmatprep.subr.bf16.mxu0 %v3763_v62  ;;  %v4226_v61 = vld [vmem:[#allocation7 + $0x28] ss:$16 sps:$4 sm:$0xff]   ;;  %v4231_v62 = vld [vmem:[#allocation7 + $0x44] ss:$16 sps:$4 sm:$0xff]  }
 0x171   :  { %1137 = vmatpush1.bf16.msra.mxu1 %v3760_v4  ;;  %1178 = vmatpush1.bf16.msra.mxu0 %v3762_v5  ;;  %v4240_v4 = vld [vmem:[#allocation7 + $0x6c] ss:$16 sps:$4 sm:$0xff]   ;;  %v4235_v5 = vld [vmem:[#allocation7 + $0x60] ss:$16 sps:$4 sm:$0xff]  }
 0x172   :  { %1138 = vmatprep.subr.bf16.mxu1 %v3769_v6  ;;  %1179 = vmatprep.subr.bf16.mxu0 %v3771_v7  ;;  %v4243_v6 = vld [vmem:[#allocation7 + $0x84] ss:$16 sps:$4 sm:$0xff]   ;;  %v4246_v7 = vld [vmem:[#allocation7 + $0x8c] ss:$16 sps:$4 sm:$0xff]  }
 0x175   :  { %1139 = vmatpush1.bf16.msra.mxu1 %v3768_v12  ;;  %1180 = vmatpush1.bf16.msra.mxu0 %v3770_v13  ;;  %v4247_v12 = vld [vmem:[#allocation7 + $0xa0] ss:$16 sps:$4 sm:$0xff]   ;;  %v4250_v13 = vld [vmem:[#allocation7 + $0xa8] ss:$16 sps:$4 sm:$0xff]  }
 0x176   :  { %1140 = vmatprep.subr.bf16.mxu1 %v3777_v14  ;;  %1181 = vmatprep.subr.bf16.mxu0 %v3779_v15  ;;  %v4255_v14 = vld [vmem:[#allocation7 + $0xc4] ss:$16 sps:$4 sm:$0xff]   ;;  %v4258_v15 = vld [vmem:[#allocation7 + $0xcc] ss:$16 sps:$4 sm:$0xff]  }
 0x179   :  { %1141 = vmatpush1.bf16.msra.mxu1 %v3776_v20  ;;  %1182 = vmatpush1.bf16.msra.mxu0 %v3778_v21  ;;  %v4259_v20 = vld [vmem:[#allocation7 + $0xe0] ss:$16 sps:$4 sm:$0xff]   ;;  %v4262_v21 = vld [vmem:[#allocation7 + $0xe8] ss:$16 sps:$4 sm:$0xff]  }
 0x17a   :  { %1142 = vmatprep.subr.bf16.mxu1 %v3785_v22  ;;  %1183 = vmatprep.subr.bf16.mxu0 %v3787_v23  ;;  %v4267_v22 = vld [vmem:[#allocation7 + $0x104] ss:$16 sps:$4 sm:$0xff]   ;;  %v4270_v23 = vld [vmem:[#allocation7 + $0x10c] ss:$16 sps:$4 sm:$0xff]  }
 0x17d   :  { %1143 = vmatpush1.bf16.msra.mxu1 %v3784_v28  ;;  %1184 = vmatpush1.bf16.msra.mxu0 %v3786_v29  ;;  %v4271_v28 = vld [vmem:[#allocation7 + $0x120] ss:$16 sps:$4 sm:$0xff]   ;;  %v4274_v29 = vld [vmem:[#allocation7 + $0x128] ss:$16 sps:$4 sm:$0xff]  }
 0x17e   :  { %1144 = vmatprep.subr.bf16.mxu1 %v3793_v32  ;;  %1185 = vmatprep.subr.bf16.mxu0 %v3795_v34  ;;  %v4279_v32 = vld [vmem:[#allocation7 + $0x144] ss:$16 sps:$4 sm:$0xff]   ;;  %v4282_v34 = vld [vmem:[#allocation7 + $0x14c] ss:$16 sps:$4 sm:$0xff]  }
 0x181   :  { %1145 = vmatpush1.bf16.msra.mxu1 %v3792_v39  ;;  %1186 = vmatpush1.bf16.msra.mxu0 %v3794_v40  ;;  %v4283_v39 = vld [vmem:[#allocation7 + $0x160] ss:$16 sps:$4 sm:$0xff]   ;;  %v4286_v40 = vld [vmem:[#allocation7 + $0x168] ss:$16 sps:$4 sm:$0xff]  }
 0x182   :  { %1146 = vmatprep.subr.bf16.mxu1 %v3801_v41  ;;  %1187 = vmatprep.subr.bf16.mxu0 %v3803_v42  ;;  %v4291_v41 = vld [vmem:[#allocation7 + $0x184] ss:$16 sps:$4 sm:$0xff]   ;;  %v4294_v42 = vld [vmem:[#allocation7 + $0x18c] ss:$16 sps:$4 sm:$0xff]  }
 0x185   :  { %1147 = vmatpush1.bf16.msra.mxu1 %v3800_v47  ;;  %1188 = vmatpush1.bf16.msra.mxu0 %v3802_v48  ;;  %v4295_v47 = vld [vmem:[#allocation7 + $0x1a0] ss:$16 sps:$4 sm:$0xff]   ;;  %v4298_v48 = vld [vmem:[#allocation7 + $0x1a8] ss:$16 sps:$4 sm:$0xff]  }
 0x186   :  { %1148 = vmatprep.subr.bf16.mxu1 %v3809_v49  ;;  %1189 = vmatprep.subr.bf16.mxu0 %v3811_v50  ;;  %v4303_v49 = vld [vmem:[#allocation7 + $0x1c4] ss:$16 sps:$4 sm:$0xff]   ;;  %v4306_v50 = vld [vmem:[#allocation7 + $0x1cc] ss:$16 sps:$4 sm:$0xff]  }
 0x189   :  { %1149 = vmatpush1.bf16.msra.mxu1 %v3808_v51  ;;  %1190 = vmatpush1.bf16.msra.mxu0 %v3810_v52  ;;  %v4301_v51 = vld [vmem:[#allocation7 + $0x1c0] ss:$16 sps:$4 sm:$0xff]   ;;  %v4304_v52 = vld [vmem:[#allocation7 + $0x1c8] ss:$16 sps:$4 sm:$0xff]  }
 0x18a   :  { %2866 = vmatprep.subr.bf16.mxu1 %v4219_v53  ;;  %3030 = vmatprep.subr.bf16.mxu0 %v4222_v54  ;;  %v4309_v53 = vld [vmem:[#allocation7 + $0x1e4] ss:$16 sps:$4 sm:$0xff]   ;;  %v4312_v54 = vld [vmem:[#allocation7 + $0x1ec] ss:$16 sps:$4 sm:$0xff]  }
 0x18c   :  { %1151 = vmatmul.mubr.bf16.vlgmr.msra.gmra.mrb[4].mxu1 %v4875_v55  ;;  %1192 = vmatmul.mubr.bf16.vlgmr.msra.gmra.mrb[8].mxu0 %v4875_v55  ;;  %v4238_v55 = vld [vmem:[#allocation7 + $0x68] ss:$16 sps:$4 sm:$0xff]  }
 0x18d   :  { %2867 = vmatpush1.bf16.msra.mxu1 %v4217_v56  ;;  %3031 = vmatpush1.bf16.msra.mxu0 %v4220_v57  ;;  %v4307_v56 = vld [vmem:[#allocation7 + $0x1e0] ss:$16 sps:$4 sm:$0xff]   ;;  %v4310_v57 = vld [vmem:[#allocation7 + $0x1e8] ss:$16 sps:$4 sm:$0xff]  }
 0x18e   :  { %2868 = vmatprep.subr.bf16.mxu1 %v4225_v58  ;;  %3032 = vmatprep.subr.bf16.mxu0 %v4228_v59  ;;  %v4315_v58 = vld [vmem:[#allocation7 + $0x204] ss:$16 sps:$4 sm:$0xff]   ;;  %v4318_v59 = vld [vmem:[#allocation7 + $0x20c] ss:$16 sps:$4 sm:$0xff]  }
 0x191   :  { %2869 = vmatpush1.bf16.msra.mxu1 %v4223_v60  ;;  %3033 = vmatpush1.bf16.msra.mxu0 %v4226_v61  ;;  %v1220_v60 = vsub.s32 2, %v4858_v30  ;;  %v4885_v61 = vld [vmem:[%s4966_s4] sm:$0xff] }
 0x192   :  { %2870 = vmatprep.subr.bf16.mxu1 %v4231_v62  ;;  %3034 = vmatprep.subr.bf16.mxu0 %v4234_v63  ;;  %v1224_v62 = vsub.s32 3, %v4858_v30  ;;  %v1213_v63 = vrot.slane %v4885_v61, %v4861_v31 }
 0x195   :  { %2871 = vmatpush1.bf16.msra.mxu1 %v4229_v0  ;;  %3035 = vmatpush1.bf16.msra.mxu0 %v4232_v2  ;;  %v1221_v0 = vrot.slane %v4885_v61, %v1220_v60  ;;  %v1217_v2 = vrot.slane %v4885_v61, %v4867_v33 }
 0x196   :  { %2872 = vmatprep.subr.bf16.mxu1 %v4237_v3  ;;  %3036 = vmatprep.subr.bf16.mxu0 %v4240_v4  ;;  %v1225_v3 = vrot.slane %v4885_v61, %v1224_v62  ;;  %v1250_v4 = vpack.c.bf16 %v1213_v63, %v1213_v63  ;;  %v4351_v63 = vld [vmem:[#allocation7 + $0x2c4] ss:$16 sps:$4 sm:$0xff]  }
 0x199   :  { %2873 = vmatpush1.bf16.msra.mxu1 %v4235_v5  ;;  %3037 = vmatpush1.bf16.msra.mxu0 %v4238_v55  ;;  %v1252_v5 = vpack.c.bf16 %v1221_v0, %v1221_v0  ;;  %v1251_v55 = vpack.c.bf16 %v1217_v2, %v1217_v2  ;;  %v4354_v0 = vld [vmem:[#allocation7 + $0x2cc] ss:$16 sps:$4 sm:$0xff]   ;;  %v4349_v2 = vld [vmem:[#allocation7 + $0x2c0] ss:$16 sps:$4 sm:$0xff]  }
 0x19a   :  { %2874 = vmatprep.subr.bf16.mxu1 %v4243_v6  ;;  %3038 = vmatprep.subr.bf16.mxu0 %v4246_v7  ;;  %v1253_v6 = vpack.c.bf16 %v1225_v3, %v1225_v3  ;;  %v1259_v7 = vpack.i.b16 %v1250_v4, %v1250_v4  ;;  %v4352_v3 = vld [vmem:[#allocation7 + $0x2c8] ss:$16 sps:$4 sm:$0xff]   ;;  %v4357_v4 = vld [vmem:[#allocation7 + $0x2e4] ss:$16 sps:$4 sm:$0xff]  }
 0x19d   :  { %2875 = vmatpush1.bf16.msra.mxu1 %v4241_v8  ;;  %3039 = vmatpush1.bf16.msra.mxu0 %v4244_v9  ;;  %v1273_v8 = vpack.i.b16 %v1252_v5, %v1252_v5  ;;  %v1266_v9 = vpack.i.b16 %v1251_v55, %v1251_v55  ;;  %v4360_v5 = vld [vmem:[#allocation7 + $0x2ec] ss:$16 sps:$4 sm:$0xff]   ;;  %v4355_v55 = vld [vmem:[#allocation7 + $0x2e0] ss:$16 sps:$4 sm:$0xff]  }
 0x19e   :  { %2876 = vmatprep.subr.bf16.mxu1 %v4249_v10  ;;  %3040 = vmatprep.subr.bf16.mxu0 %v4252_v11  ;;  %v1280_v10 = vpack.i.b16 %v1253_v6, %v1253_v6  ;;  %v1264_v11 = vrot.slane %v1259_v7, %v4861_v31  ;;  %v4358_v6 = vld [vmem:[#allocation7 + $0x2e8] ss:$16 sps:$4 sm:$0xff]   ;;  %v4363_v7 = vld [vmem:[#allocation7 + $0x304] ss:$16 sps:$4 sm:$0xff]  }
 0x1a1   :  { %2877 = vmatpush1.bf16.msra.mxu1 %v4247_v12  ;;  %3041 = vmatpush1.bf16.msra.mxu0 %v4250_v13  ;;  %v1278_v12 = vrot.slane %v1273_v8, %v4861_v31  ;;  %v4366_v8 = vld [vmem:[#allocation7 + $0x30c] ss:$16 sps:$4 sm:$0xff]  }
 0x1a2   :  { %2878 = vmatprep.subr.bf16.mxu1 %v4255_v14  ;;  %3042 = vmatprep.subr.bf16.mxu0 %v4258_v15  ;;  %v1271_v15 = vrot.slane %v1266_v9, %v4861_v31  ;;  %v4361_v9 = vld [vmem:[#allocation7 + $0x300] ss:$16 sps:$4 sm:$0xff]  }
 0x1a5   :  { %2879 = vmatpush1.bf16.msra.mxu1 %v4253_v16  ;;  %3043 = vmatpush1.bf16.msra.mxu0 %v4256_v17 }
 0x1a6   :  { %2880 = vmatprep.subr.bf16.mxu1 %v4261_v18  ;;  %3044 = vmatprep.subr.bf16.mxu0 %v4264_v19 }
 0x1a9   :  { %2881 = vmatpush1.bf16.msra.mxu1 %v4259_v20  ;;  %3045 = vmatpush1.bf16.msra.mxu0 %v4262_v21  ;;  %v1285_v20 = vrot.slane %v1280_v10, %v4861_v31  ;;  %v4364_v10 = vld [vmem:[#allocation7 + $0x308] ss:$16 sps:$4 sm:$0xff]  }
 0x1aa   :  { %2882 = vmatprep.subr.bf16.mxu1 %v4267_v22  ;;  %3046 = vmatprep.subr.bf16.mxu0 %v4270_v23 }
 0x1ad   :  { %2883 = vmatpush1.bf16.msra.mxu1 %v4265_v24  ;;  %3047 = vmatpush1.bf16.msra.mxu0 %v4268_v25 }
 0x1ae   :  { %2884 = vmatprep.subr.bf16.mxu1 %v4273_v26  ;;  %3048 = vmatprep.subr.bf16.mxu0 %v4276_v27 }
 0x1b1   :  { %2885 = vmatpush1.bf16.msra.mxu1 %v4271_v28  ;;  %3049 = vmatpush1.bf16.msra.mxu0 %v4274_v29 }
 0x1b2   :  { %2886 = vmatprep.subr.bf16.mxu1 %v4279_v32  ;;  %3050 = vmatprep.subr.bf16.mxu0 %v4282_v34 }
 0x1b5   :  { %2887 = vmatpush1.bf16.msra.mxu1 %v4277_v35  ;;  %3051 = vmatpush1.bf16.msra.mxu0 %v4280_v36  ;;  %v4313_v35 = vld [vmem:[#allocation7 + $0x200] ss:$16 sps:$4 sm:$0xff]   ;;  %v4316_v36 = vld [vmem:[#allocation7 + $0x208] ss:$16 sps:$4 sm:$0xff]  }
 0x1b6   :  { %2888 = vmatprep.subr.bf16.mxu1 %v4285_v37  ;;  %3052 = vmatprep.subr.bf16.mxu0 %v4288_v38  ;;  %v4321_v38 = vld [vmem:[#allocation7 + $0x224] ss:$16 sps:$4 sm:$0xff]  }
 0x1b9   :  { %2889 = vmatpush1.bf16.msra.mxu1 %v4283_v39  ;;  %3053 = vmatpush1.bf16.msra.mxu0 %v4286_v40  ;;  %v4324_v39 = vld [vmem:[#allocation7 + $0x22c] ss:$16 sps:$4 sm:$0xff]  }
 0x1ba   :  { %2890 = vmatprep.subr.bf16.mxu1 %v4291_v41  ;;  %3054 = vmatprep.subr.bf16.mxu0 %v4294_v42  ;;  %v4319_v41 = vld [vmem:[#allocation7 + $0x220] ss:$16 sps:$4 sm:$0xff]   ;;  %v4322_v42 = vld [vmem:[#allocation7 + $0x228] ss:$16 sps:$4 sm:$0xff]  }
 0x1bd   :  { %2891 = vmatpush1.bf16.msra.mxu1 %v4289_v43  ;;  %3055 = vmatpush1.bf16.msra.mxu0 %v4292_v44  ;;  %v4327_v43 = vld [vmem:[#allocation7 + $0x244] ss:$16 sps:$4 sm:$0xff]   ;;  %v4330_v44 = vld [vmem:[#allocation7 + $0x24c] ss:$16 sps:$4 sm:$0xff]  }
 0x1be   :  { %2892 = vmatprep.subr.bf16.mxu1 %v4297_v45  ;;  %3056 = vmatprep.subr.bf16.mxu0 %v4300_v46  ;;  %v4325_v45 = vld [vmem:[#allocation7 + $0x240] ss:$16 sps:$4 sm:$0xff]   ;;  %v4328_v46 = vld [vmem:[#allocation7 + $0x248] ss:$16 sps:$4 sm:$0xff]  }
 0x1c1   :  { %2893 = vmatpush1.bf16.msra.mxu1 %v4295_v47  ;;  %3057 = vmatpush1.bf16.msra.mxu0 %v4298_v48  ;;  %v4333_v47 = vld [vmem:[#allocation7 + $0x264] ss:$16 sps:$4 sm:$0xff]   ;;  %v4336_v48 = vld [vmem:[#allocation7 + $0x26c] ss:$16 sps:$4 sm:$0xff]  }
 0x1c2   :  { %2894 = vmatprep.subr.bf16.mxu1 %v4303_v49  ;;  %3058 = vmatprep.subr.bf16.mxu0 %v4306_v50  ;;  %v4331_v49 = vld [vmem:[#allocation7 + $0x260] ss:$16 sps:$4 sm:$0xff]   ;;  %v4334_v50 = vld [vmem:[#allocation7 + $0x268] ss:$16 sps:$4 sm:$0xff]  }
 0x1c5   :  { %2895 = vmatpush1.bf16.msra.mxu1 %v4301_v51  ;;  %3059 = vmatpush1.bf16.msra.mxu0 %v4304_v52  ;;  %v4339_v51 = vld [vmem:[#allocation7 + $0x284] ss:$16 sps:$4 sm:$0xff]   ;;  %v4342_v52 = vld [vmem:[#allocation7 + $0x28c] ss:$16 sps:$4 sm:$0xff]  }
 0x1c6   :  { %2896 = vmatprep.subr.bf16.mxu1 %v4309_v53  ;;  %3060 = vmatprep.subr.bf16.mxu0 %v4312_v54  ;;  %v4337_v53 = vld [vmem:[#allocation7 + $0x280] ss:$16 sps:$4 sm:$0xff]   ;;  %v4340_v54 = vld [vmem:[#allocation7 + $0x288] ss:$16 sps:$4 sm:$0xff]  }
 0x1c9   :  { %2897 = vmatpush1.bf16.msra.mxu1 %v4307_v56  ;;  %3061 = vmatpush1.bf16.msra.mxu0 %v4310_v57  ;;  %v4345_v56 = vld [vmem:[#allocation7 + $0x2a4] ss:$16 sps:$4 sm:$0xff]   ;;  %v4348_v57 = vld [vmem:[#allocation7 + $0x2ac] ss:$16 sps:$4 sm:$0xff]  }
 0x1ca   :  { %2907 = vmatprep.subr.bf16.mxu1 %v4315_v58  ;;  %3071 = vmatprep.subr.bf16.mxu0 %v4318_v59  ;;  %v4343_v58 = vld [vmem:[#allocation7 + $0x2a0] ss:$16 sps:$4 sm:$0xff]   ;;  %v4346_v59 = vld [vmem:[#allocation7 + $0x2a8] ss:$16 sps:$4 sm:$0xff]  }
 0x21f   :  { %v1070_v13 = vpop.f32.mrb[0].mxu1  ;;  %v1111_v14 = vpop.f32.mrb[4].mxu0 }
 0x220   :  { %v1200_v16 = vpack.c.bf16 %v1070_v13, %v1070_v13  ;;  %v1202_v17 = vpack.c.bf16 %v1111_v14, %v1111_v14  ;;  %v1072_v18 = vpop.f32.mrb[1].mxu1  ;;  %v1113_v19 = vpop.f32.mrb[5].mxu0  ;;  %v4367_v13 = vld [vmem:[#allocation7 + $0x320] ss:$16 sps:$4 sm:$0xff]   ;;  %v4370_v14 = vld [vmem:[#allocation7 + $0x328] ss:$16 sps:$4 sm:$0xff]  }
 0x221   :  { %v1201_v21 = vpack.c.bf16 %v1072_v18, %v1072_v18  ;;  %v1203_v22 = vpack.c.bf16 %v1113_v19, %v1113_v19  ;;  %v1074_v23 = vpop.f32.mrb[2].mxu1  ;;  %v1115_v24 = vpop.f32.mrb[6].mxu0  ;;  %v4376_v18 = vld [vmem:[#allocation7 + $0x348] ss:$16 sps:$4 sm:$0xff]   ;;  %v4381_v19 = vld [vmem:[#allocation7 + $0x364] ss:$16 sps:$4 sm:$0xff]  }
 0x222   :  { %v1314_v25 = vadd.bf16 %v1264_v11, %v1200_v16  ;;  %v4902_v26 = vadd.bf16 %v1278_v12, %v1202_v17  ;;  %v1075_v27 = vpop.f32.mrb[3].mxu1  ;;  %v1116_v28 = vpop.f32.mrb[7].mxu0  ;;  %v4369_v11 = vld [vmem:[#allocation7 + $0x324] ss:$16 sps:$4 sm:$0xff]   ;;  %v4372_v12 = vld [vmem:[#allocation7 + $0x32c] ss:$16 sps:$4 sm:$0xff]  }
 0x223   :  { %v1315_v29 = vadd.bf16 %v1271_v15, %v1201_v21  ;;  %v1317_v32 = vadd.bf16 %v1285_v20, %v1203_v22  ;;  %v4375_v15 = vld [vmem:[#allocation7 + $0x344] ss:$16 sps:$4 sm:$0xff]   ;;  %v4378_v16 = vld [vmem:[#allocation7 + $0x34c] ss:$16 sps:$4 sm:$0xff]   ;;  %v4373_v17 = vld [vmem:[#allocation7 + $0x340] ss:$16 sps:$4 sm:$0xff]  }
 0x224   :  { %v1322_v37 = vmax.bf16 %v4739_v1, %v1314_v25  ;;  %v4384_v20 = vld [vmem:[#allocation7 + $0x36c] ss:$16 sps:$4 sm:$0xff]   ;;  %v1228_v21 = vsub.s32 4, %v4858_v30  ;;  %v1236_v22 = vsub.s32 6, %v4858_v30  ;;  %v1232_v23 = vsub.s32 5, %v4858_v30 }
 0x225   :  { %v1323_v34 = vmax.bf16 %v4739_v1, %v1315_v29  ;;  %v1325_v40 = vmax.bf16 %v4739_v1, %v1317_v32  ;;  %v1240_v24 = vsub.s32 7, %v4858_v30  ;;  %v4379_v25 = vld [vmem:[#allocation7 + $0x360] ss:$16 sps:$4 sm:$0xff]   ;;  %v4382_v27 = vld [vmem:[#allocation7 + $0x368] ss:$16 sps:$4 sm:$0xff]  }
 0x226   :  { %v4387_v28 = vld [vmem:[#allocation7 + $0x384] ss:$16 sps:$4 sm:$0xff]   ;;  %v4390_v29 = vld [vmem:[#allocation7 + $0x38c] ss:$16 sps:$4 sm:$0xff]   ;;  %v1229_v32 = vrot.slane %v4885_v61, %v1228_v21  ;;  %v1324_v21 = vmax.bf16 %v4739_v1, %v4902_v26  ;;  %v4421_v26 = vld [vmem:[#allocation7 + $0x440] ss:$16 sps:$4 sm:$0xff]  }
 0x227   :  { %2898 = vmatprep.mubr.bf16.mxu1 %v1323_v34  ;;  %3062 = vmatprep.mubr.bf16.mxu0 %v1323_v34  ;;  %v1237_v34 = vrot.slane %v4885_v61, %v1236_v22  ;;  %v4412_v22 = vld [vmem:[#allocation7 + $0x408] ss:$16 sps:$4 sm:$0xff]  }
 0x228   :  { %2899 = vmatmul.mubr.bf16.vlgmr.msra.gmra.mrb[8].mxu1 %v1322_v37  ;;  %3063 = vmatmul.mubr.bf16.vlgmr.msra.gmra.mrb[12].mxu0 %v1322_v37  ;;  %v4385_v37 = vld [vmem:[#allocation7 + $0x380] ss:$16 sps:$4 sm:$0xff]  }
 0x229   :  { %2908 = vmatpush1.bf16.msra.mxu1 %v4313_v35  ;;  %3072 = vmatpush1.bf16.msra.mxu0 %v4316_v36  ;;  %v1233_v35 = vrot.slane %v4885_v61, %v1232_v23  ;;  %v1241_v36 = vrot.slane %v4885_v61, %v1240_v24  ;;  %v4417_v24 = vld [vmem:[#allocation7 + $0x424] ss:$16 sps:$4 sm:$0xff]  }
 0x22a   :  { %2939 = vmatprep.mubr.bf16.mxu1 %v1325_v40  ;;  %3103 = vmatprep.mubr.bf16.mxu0 %v1325_v40  ;;  %v4396_v40 = vld [vmem:[#allocation7 + $0x3ac] ss:$16 sps:$4 sm:$0xff]  }
 0x22b   :  { %2909 = vmatprep.subr.bf16.mxu1 %v4321_v38  ;;  %3073 = vmatprep.subr.bf16.mxu0 %v4324_v39  ;;  %v4388_v38 = vld [vmem:[#allocation7 + $0x388] ss:$16 sps:$4 sm:$0xff]   ;;  %v4393_v39 = vld [vmem:[#allocation7 + $0x3a4] ss:$16 sps:$4 sm:$0xff]  }
 0x22d   :  { %2910 = vmatpush1.bf16.msra.mxu1 %v4319_v41  ;;  %3074 = vmatpush1.bf16.msra.mxu0 %v4322_v42  ;;  %v1254_v41 = vpack.c.bf16 %v1229_v32, %v1229_v32  ;;  %v1256_v42 = vpack.c.bf16 %v1237_v34, %v1237_v34  ;;  %v4426_v32 = vld [vmem:[#allocation7 + $0x44c] ss:$16 sps:$4 sm:$0xff]   ;;  %v4424_v34 = vld [vmem:[#allocation7 + $0x448] ss:$16 sps:$4 sm:$0xff]  }
 0x22e   :  { %2911 = vmatprep.subr.bf16.mxu1 %v4327_v43  ;;  %3075 = vmatprep.subr.bf16.mxu0 %v4330_v44  ;;  %v1255_v43 = vpack.c.bf16 %v1233_v35, %v1233_v35  ;;  %v1257_v44 = vpack.c.bf16 %v1241_v36, %v1241_v36  ;;  %v4429_v35 = vld [vmem:[#allocation7 + $0x464] ss:$16 sps:$4 sm:$0xff]   ;;  %v4432_v36 = vld [vmem:[#allocation7 + $0x46c] ss:$16 sps:$4 sm:$0xff]  }
 0x22f   :  { %v1301_v61 = vpack.i.b16 %v1256_v42, %v1256_v42  ;;  %v4436_v42 = vld [vmem:[#allocation7 + $0x488] ss:$16 sps:$4 sm:$0xff]  }
 0x231   :  { %2912 = vmatpush1.bf16.msra.mxu1 %v4325_v45  ;;  %3076 = vmatpush1.bf16.msra.mxu0 %v4328_v46  ;;  %v4391_v45 = vld [vmem:[#allocation7 + $0x3a0] ss:$16 sps:$4 sm:$0xff]   ;;  %v4394_v46 = vld [vmem:[#allocation7 + $0x3a8] ss:$16 sps:$4 sm:$0xff]  }
 0x232   :  { %2913 = vmatprep.subr.bf16.mxu1 %v4333_v47  ;;  %3077 = vmatprep.subr.bf16.mxu0 %v4336_v48  ;;  %v1287_v47 = vpack.i.b16 %v1254_v41, %v1254_v41  ;;  %v4399_v48 = vld [vmem:[#allocation7 + $0x3c4] ss:$16 sps:$4 sm:$0xff]   ;;  %v4433_v41 = vld [vmem:[#allocation7 + $0x480] ss:$16 sps:$4 sm:$0xff]  }
 0x235   :  { %2914 = vmatpush1.bf16.msra.mxu1 %v4331_v49  ;;  %3078 = vmatpush1.bf16.msra.mxu0 %v4334_v50  ;;  %v4402_v49 = vld [vmem:[#allocation7 + $0x3cc] ss:$16 sps:$4 sm:$0xff]   ;;  %v1294_v50 = vpack.i.b16 %v1255_v43, %v1255_v43  ;;  %v4441_v43 = vld [vmem:[#allocation7 + $0x4a4] ss:$16 sps:$4 sm:$0xff]  }
 0x236   :  { %2915 = vmatprep.subr.bf16.mxu1 %v4339_v51  ;;  %3079 = vmatprep.subr.bf16.mxu0 %v4342_v52  ;;  %v1308_v51 = vpack.i.b16 %v1257_v44, %v1257_v44  ;;  %v4397_v52 = vld [vmem:[#allocation7 + $0x3c0] ss:$16 sps:$4 sm:$0xff]   ;;  %v4444_v44 = vld [vmem:[#allocation7 + $0x4ac] ss:$16 sps:$4 sm:$0xff]  }
 0x239   :  { %2916 = vmatpush1.bf16.msra.mxu1 %v4337_v53  ;;  %3080 = vmatpush1.bf16.msra.mxu0 %v4340_v54  ;;  %v4400_v53 = vld [vmem:[#allocation7 + $0x3c8] ss:$16 sps:$4 sm:$0xff]   ;;  %v1292_v54 = vrot.slane %v1287_v47, %v4861_v31  ;;  %v4447_v47 = vld [vmem:[#allocation7 + $0x4c4] ss:$16 sps:$4 sm:$0xff]  }
 0x23a   :  { %2917 = vmatprep.subr.bf16.mxu1 %v4345_v56  ;;  %3081 = vmatprep.subr.bf16.mxu0 %v4348_v57  ;;  %v1306_v56 = vrot.slane %v1301_v61, %v4861_v31  ;;  %v4405_v57 = vld [vmem:[#allocation7 + $0x3e4] ss:$16 sps:$4 sm:$0xff]   ;;  %v4450_v61 = vld [vmem:[#allocation7 + $0x4cc] ss:$16 sps:$4 sm:$0xff]  }
 0x23d   :  { %2918 = vmatpush1.bf16.msra.mxu1 %v4343_v58  ;;  %3082 = vmatpush1.bf16.msra.mxu0 %v4346_v59  ;;  %v4408_v58 = vld [vmem:[#allocation7 + $0x3ec] ss:$16 sps:$4 sm:$0xff]  }
 0x23e   :  { %2919 = vmatprep.subr.bf16.mxu1 %v4351_v63  ;;  %3083 = vmatprep.subr.bf16.mxu0 %v4354_v0  ;;  %v1299_v0 = vrot.slane %v1294_v50, %v4861_v31  ;;  %v4453_v50 = vld [vmem:[#allocation7 + $0x4e4] ss:$16 sps:$4 sm:$0xff]  }
 0x241   :  { %2920 = vmatpush1.bf16.msra.mxu1 %v4349_v2  ;;  %3084 = vmatpush1.bf16.msra.mxu0 %v4352_v3  ;;  %v1313_v2 = vrot.slane %v1308_v51, %v4861_v31  ;;  %v4456_v51 = vld [vmem:[#allocation7 + $0x4ec] ss:$16 sps:$4 sm:$0xff]  }
 0x242   :  { %2921 = vmatprep.subr.bf16.mxu1 %v4357_v4  ;;  %3085 = vmatprep.subr.bf16.mxu0 %v4360_v5 }
 0x245   :  { %2922 = vmatpush1.bf16.msra.mxu1 %v4355_v55  ;;  %3086 = vmatpush1.bf16.msra.mxu0 %v4358_v6 }
 0x246   :  { %2923 = vmatprep.subr.bf16.mxu1 %v4363_v7  ;;  %3087 = vmatprep.subr.bf16.mxu0 %v4366_v8 }
 0x249   :  { %2924 = vmatpush1.bf16.msra.mxu1 %v4361_v9  ;;  %3088 = vmatpush1.bf16.msra.mxu0 %v4364_v10  ;;  %v4403_v10 = vld [vmem:[#allocation7 + $0x3e0] ss:$16 sps:$4 sm:$0xff]  }
 0x24a   :  { %2925 = vmatprep.subr.bf16.mxu1 %v4369_v11  ;;  %3089 = vmatprep.subr.bf16.mxu0 %v4372_v12  ;;  %v4406_v11 = vld [vmem:[#allocation7 + $0x3e8] ss:$16 sps:$4 sm:$0xff]  }
 0x24d   :  { %2926 = vmatpush1.bf16.msra.mxu1 %v4367_v13  ;;  %3090 = vmatpush1.bf16.msra.mxu0 %v4370_v14 }
 0x24e   :  { %2927 = vmatprep.subr.bf16.mxu1 %v4375_v15  ;;  %3091 = vmatprep.subr.bf16.mxu0 %v4378_v16  ;;  %v4411_v16 = vld [vmem:[#allocation7 + $0x404] ss:$16 sps:$4 sm:$0xff]  }
 0x251   :  { %2928 = vmatpush1.bf16.msra.mxu1 %v4373_v17  ;;  %3092 = vmatpush1.bf16.msra.mxu0 %v4376_v18  ;;  %v4414_v17 = vld [vmem:[#allocation7 + $0x40c] ss:$16 sps:$4 sm:$0xff]  }
 0x252   :  { %2929 = vmatprep.subr.bf16.mxu1 %v4381_v19  ;;  %3093 = vmatprep.subr.bf16.mxu0 %v4384_v20  ;;  %v4409_v20 = vld [vmem:[#allocation7 + $0x400] ss:$16 sps:$4 sm:$0xff]  }
 0x255   :  { %2930 = vmatpush1.bf16.msra.mxu1 %v4379_v25  ;;  %3094 = vmatpush1.bf16.msra.mxu0 %v4382_v27  ;;  %v4420_v25 = vld [vmem:[#allocation7 + $0x42c] ss:$16 sps:$4 sm:$0xff]   ;;  %v4415_v27 = vld [vmem:[#allocation7 + $0x420] ss:$16 sps:$4 sm:$0xff]  }
 0x256   :  { %2931 = vmatprep.subr.bf16.mxu1 %v4387_v28  ;;  %3095 = vmatprep.subr.bf16.mxu0 %v4390_v29  ;;  %v4418_v28 = vld [vmem:[#allocation7 + $0x428] ss:$16 sps:$4 sm:$0xff]   ;;  %v4423_v29 = vld [vmem:[#allocation7 + $0x444] ss:$16 sps:$4 sm:$0xff]  }
 0x259   :  { %2932 = vmatpush1.bf16.msra.mxu1 %v4385_v37  ;;  %3096 = vmatpush1.bf16.msra.mxu0 %v4388_v38  ;;  %v4427_v37 = vld [vmem:[#allocation7 + $0x460] ss:$16 sps:$4 sm:$0xff]   ;;  %v4430_v38 = vld [vmem:[#allocation7 + $0x468] ss:$16 sps:$4 sm:$0xff]  }
 0x25a   :  { %2933 = vmatprep.subr.bf16.mxu1 %v4393_v39  ;;  %3097 = vmatprep.subr.bf16.mxu0 %v4396_v40  ;;  %v4435_v39 = vld [vmem:[#allocation7 + $0x484] ss:$16 sps:$4 sm:$0xff]   ;;  %v4438_v40 = vld [vmem:[#allocation7 + $0x48c] ss:$16 sps:$4 sm:$0xff]  }
 0x25d   :  { %2934 = vmatpush1.bf16.msra.mxu1 %v4391_v45  ;;  %3098 = vmatpush1.bf16.msra.mxu0 %v4394_v46  ;;  %v4439_v45 = vld [vmem:[#allocation7 + $0x4a0] ss:$16 sps:$4 sm:$0xff]   ;;  %v4442_v46 = vld [vmem:[#allocation7 + $0x4a8] ss:$16 sps:$4 sm:$0xff]  }
 0x25e   :  { %2935 = vmatprep.subr.bf16.mxu1 %v4399_v48  ;;  %3099 = vmatprep.subr.bf16.mxu0 %v4402_v49  ;;  %v4445_v48 = vld [vmem:[#allocation7 + $0x4c0] ss:$16 sps:$4 sm:$0xff]   ;;  %v4448_v49 = vld [vmem:[#allocation7 + $0x4c8] ss:$16 sps:$4 sm:$0xff]  }
 0x25f   :  { %v1152_v59 = vpop.f32.mrb[4].mxu1  ;;  %v1193_v63 = vpop.f32.mrb[8].mxu0 }
 0x260   :  { %v1204_v3 = vpack.c.bf16 %v1152_v59, %v1152_v59  ;;  %v1206_v4 = vpack.c.bf16 %v1193_v63, %v1193_v63  ;;  %v1154_v5 = vpop.f32.mrb[5].mxu1  ;;  %v1195_v55 = vpop.f32.mrb[9].mxu0  ;;  %v4465_v59 = vld [vmem:[#allocation7 + $0x524] ss:$16 sps:$4 sm:$0xff]   ;;  %v4468_v63 = vld [vmem:[#allocation7 + $0x52c] ss:$16 sps:$4 sm:$0xff]  }
 0x261   :  { %v1205_v6 = vpack.c.bf16 %v1154_v5, %v1154_v5  ;;  %v1207_v7 = vpack.c.bf16 %v1195_v55, %v1195_v55  ;;  %v1156_v8 = vpop.f32.mrb[6].mxu1  ;;  %v1197_v9 = vpop.f32.mrb[10].mxu0  ;;  %2936 = vmatpush1.bf16.msra.mxu1 %v4397_v52  ;;  %3100 = vmatpush1.bf16.msra.mxu0 %v4400_v53  ;;  %v4451_v52 = vld [vmem:[#allocation7 + $0x4e0] ss:$16 sps:$4 sm:$0xff]   ;;  %v4454_v53 = vld [vmem:[#allocation7 + $0x4e8] ss:$16 sps:$4 sm:$0xff]  }
 0x262   :  { %v4919_v12 = vadd.bf16 %v1292_v54, %v1204_v3  ;;  %v4921_v13 = vadd.bf16 %v1306_v56, %v1206_v4  ;;  %v1157_v14 = vpop.f32.mrb[7].mxu1  ;;  %v1198_v15 = vpop.f32.mrb[11].mxu0  ;;  %2937 = vmatprep.subr.bf16.mxu1 %v4405_v57  ;;  %3101 = vmatprep.subr.bf16.mxu0 %v4408_v58  ;;  %v4459_v54 = vld [vmem:[#allocation7 + $0x504] ss:$16 sps:$4 sm:$0xff]   ;;  %v4462_v56 = vld [vmem:[#allocation7 + $0x50c] ss:$16 sps:$4 sm:$0xff]  }
 0x263   :  { %v1319_v18 = vadd.bf16 %v1299_v0, %v1205_v6  ;;  %v4923_v19 = vadd.bf16 %v1313_v2, %v1207_v7  ;;  %v4457_v57 = vld [vmem:[#allocation7 + $0x500] ss:$16 sps:$4 sm:$0xff]   ;;  %v4460_v58 = vld [vmem:[#allocation7 + $0x508] ss:$16 sps:$4 sm:$0xff]   ;;  %v4471_v3 = vld [vmem:[#allocation7 + $0x544] ss:$16 sps:$4 sm:$0xff]  }
 0x264   :  { %v4463_v0 = vld [vmem:[#allocation7 + $0x520] ss:$16 sps:$4 sm:$0xff]   ;;  %v4466_v2 = vld [vmem:[#allocation7 + $0x528] ss:$16 sps:$4 sm:$0xff]   ;;  %v4474_v4 = vld [vmem:[#allocation7 + $0x54c] ss:$16 sps:$4 sm:$0xff]  }
 0x265   :  { %2938 = vmatpush1.bf16.msra.mxu1 %v4403_v10  ;;  %3102 = vmatpush1.bf16.msra.mxu0 %v4406_v11  ;;  %v1327_v23 = vmax.bf16 %v4739_v1, %v1319_v18  ;;  %v4469_v5 = vld [vmem:[#allocation7 + $0x540] ss:$16 sps:$4 sm:$0xff]   ;;  %v4472_v55 = vld [vmem:[#allocation7 + $0x548] ss:$16 sps:$4 sm:$0xff]   ;;  %v4477_v6 = vld [vmem:[#allocation7 + $0x564] ss:$16 sps:$4 sm:$0xff]  }
 0x266   :  { %2948 = vmatprep.subr.bf16.mxu1 %v4411_v16  ;;  %3112 = vmatprep.subr.bf16.mxu0 %v4414_v17  ;;  %v4480_v7 = vld [vmem:[#allocation7 + $0x56c] ss:$16 sps:$4 sm:$0xff]   ;;  %v4475_v8 = vld [vmem:[#allocation7 + $0x560] ss:$16 sps:$4 sm:$0xff]   ;;  %v4478_v9 = vld [vmem:[#allocation7 + $0x568] ss:$16 sps:$4 sm:$0xff]  }
 0x267   :  { %v4483_v10 = vld [vmem:[#allocation7 + $0x584] ss:$16 sps:$4 sm:$0xff]   ;;  %v4486_v11 = vld [vmem:[#allocation7 + $0x58c] ss:$16 sps:$4 sm:$0xff]   ;;  %v4481_v14 = vld [vmem:[#allocation7 + $0x580] ss:$16 sps:$4 sm:$0xff]  }
 0x268   :  { %2940 = vmatmul.mubr.bf16.vlgmr.msra.gmra.mrb[8].mxu1 %v1324_v21  ;;  %3104 = vmatmul.mubr.bf16.vlgmr.msra.gmra.mrb[12].mxu0 %v1324_v21  ;;  %v4484_v15 = vld [vmem:[#allocation7 + $0x588] ss:$16 sps:$4 sm:$0xff]   ;;  %v4489_v16 = vld [vmem:[#allocation7 + $0x5a4] ss:$16 sps:$4 sm:$0xff]   ;;  %v4492_v17 = vld [vmem:[#allocation7 + $0x5ac] ss:$16 sps:$4 sm:$0xff]  }
 0x269   :  { %2949 = vmatpush1.bf16.msra.mxu1 %v4409_v20  ;;  %2980 = vmatprep.mubr.bf16.mxu1 %v1327_v23  ;;  %v4487_v18 = vld [vmem:[#allocation7 + $0x5a0] ss:$16 sps:$4 sm:$0xff]   ;;  %v4490_v20 = vld [vmem:[#allocation7 + $0x5a8] ss:$16 sps:$4 sm:$0xff]   ;;  %v4495_v21 = vld [vmem:[#allocation7 + $0x5c4] ss:$16 sps:$4 sm:$0xff]  }
 0x26a   :  { %3113 = vmatpush1.bf16.msra.mxu0 %v4412_v22  ;;  %3144 = vmatprep.mubr.bf16.mxu0 %v1327_v23  ;;  %v4498_v22 = vld [vmem:[#allocation7 + $0x5cc] ss:$16 sps:$4 sm:$0xff]   ;;  %v4493_v23 = vld [vmem:[#allocation7 + $0x5c0] ss:$16 sps:$4 sm:$0xff]  }
 0x26b   :  { %2950 = vmatprep.subr.bf16.mxu1 %v4417_v24  ;;  %3114 = vmatprep.subr.bf16.mxu0 %v4420_v25  ;;  %v4496_v24 = vld [vmem:[#allocation7 + $0x5c8] ss:$16 sps:$4 sm:$0xff]   ;;  %v4501_v25 = vld [vmem:[#allocation7 + $0x5e4] ss:$16 sps:$4 sm:$0xff]  }
 0x26d   :  { %2951 = vmatpush1.bf16.msra.mxu1 %v4415_v27  ;;  %v4504_v27 = vld [vmem:[#allocation7 + $0x5ec] ss:$16 sps:$4 sm:$0xff]  }
 0x26e   :  { %3115 = vmatpush1.bf16.msra.mxu0 %v4418_v28  ;;  %2952 = vmatprep.subr.bf16.mxu1 %v4423_v29  ;;  %v4499_v28 = vld [vmem:[#allocation7 + $0x5e0] ss:$16 sps:$4 sm:$0xff]   ;;  %v4502_v29 = vld [vmem:[#allocation7 + $0x5e8] ss:$16 sps:$4 sm:$0xff]  }
 0x26f   :  { %3116 = vmatprep.subr.bf16.mxu0 %v4426_v32  ;;  %v4507_v32 = vld [vmem:[#allocation7 + $0x604] ss:$16 sps:$4 sm:$0xff]  }
 0x271   :  { %2953 = vmatpush1.bf16.msra.mxu1 %v4421_v26  ;;  %v4510_v26 = vld [vmem:[#allocation7 + $0x60c] ss:$16 sps:$4 sm:$0xff]  }
 0x272   :  { %3117 = vmatpush1.bf16.msra.mxu0 %v4424_v34  ;;  %2954 = vmatprep.subr.bf16.mxu1 %v4429_v35  ;;  %v4505_v34 = vld [vmem:[#allocation7 + $0x600] ss:$16 sps:$4 sm:$0xff]   ;;  %v1326_v35 = vmax.bf16 %v4739_v1, %v4919_v12  ;;  %v4522_v12 = vld [vmem:[#allocation7 + $0x64c] ss:$16 sps:$4 sm:$0xff]  }
 0x273   :  { %3118 = vmatprep.subr.bf16.mxu0 %v4432_v36  ;;  %v4508_v36 = vld [vmem:[#allocation7 + $0x608] ss:$16 sps:$4 sm:$0xff]  }
 0x275   :  { %2955 = vmatpush1.bf16.msra.mxu1 %v4427_v37  ;;  %v4513_v37 = vld [vmem:[#allocation7 + $0x624] ss:$16 sps:$4 sm:$0xff]  }
 0x276   :  { %3119 = vmatpush1.bf16.msra.mxu0 %v4430_v38  ;;  %2956 = vmatprep.subr.bf16.mxu1 %v4435_v39  ;;  %v1329_v38 = vmax.bf16 %v4739_v1, %v4923_v19  ;;  %v4516_v39 = vld [vmem:[#allocation7 + $0x62c] ss:$16 sps:$4 sm:$0xff]  }
 0x277   :  { %3120 = vmatprep.subr.bf16.mxu0 %v4438_v40  ;;  %v4511_v40 = vld [vmem:[#allocation7 + $0x620] ss:$16 sps:$4 sm:$0xff]   ;;  %v4528_v19 = vld [vmem:[#allocation7 + $0x66c] ss:$16 sps:$4 sm:$0xff]  }
 0x279   :  { %2957 = vmatpush1.bf16.msra.mxu1 %v4433_v41  ;;  %v4514_v41 = vld [vmem:[#allocation7 + $0x628] ss:$16 sps:$4 sm:$0xff]  }
 0x27a   :  { %3121 = vmatpush1.bf16.msra.mxu0 %v4436_v42  ;;  %2958 = vmatprep.subr.bf16.mxu1 %v4441_v43  ;;  %v4519_v42 = vld [vmem:[#allocation7 + $0x644] ss:$16 sps:$4 sm:$0xff]   ;;  %v4517_v43 = vld [vmem:[#allocation7 + $0x640] ss:$16 sps:$4 sm:$0xff]  }
 0x27b   :  { %3122 = vmatprep.subr.bf16.mxu0 %v4444_v44  ;;  %v4520_v44 = vld [vmem:[#allocation7 + $0x648] ss:$16 sps:$4 sm:$0xff]  }
 0x27d   :  { %2959 = vmatpush1.bf16.msra.mxu1 %v4439_v45  ;;  %v4525_v45 = vld [vmem:[#allocation7 + $0x664] ss:$16 sps:$4 sm:$0xff]  }
 0x27e   :  { %3123 = vmatpush1.bf16.msra.mxu0 %v4442_v46  ;;  %2960 = vmatprep.subr.bf16.mxu1 %v4447_v47  ;;  %v4523_v46 = vld [vmem:[#allocation7 + $0x660] ss:$16 sps:$4 sm:$0xff]   ;;  %v4526_v47 = vld [vmem:[#allocation7 + $0x668] ss:$16 sps:$4 sm:$0xff]  }
 0x27f   :  { %3124 = vmatprep.subr.bf16.mxu0 %v4450_v61  ;;  %v4531_v61 = vld [vmem:[#allocation7 + $0x684] ss:$16 sps:$4 sm:$0xff]  }
 0x281   :  { %2961 = vmatpush1.bf16.msra.mxu1 %v4445_v48  ;;  %v4534_v48 = vld [vmem:[#allocation7 + $0x68c] ss:$16 sps:$4 sm:$0xff]  }
 0x282   :  { %3125 = vmatpush1.bf16.msra.mxu0 %v4448_v49  ;;  %2962 = vmatprep.subr.bf16.mxu1 %v4453_v50  ;;  %v4529_v49 = vld [vmem:[#allocation7 + $0x680] ss:$16 sps:$4 sm:$0xff]   ;;  %v4532_v50 = vld [vmem:[#allocation7 + $0x688] ss:$16 sps:$4 sm:$0xff]  }
 0x283   :  { %3126 = vmatprep.subr.bf16.mxu0 %v4456_v51  ;;  %v4537_v51 = vld [vmem:[#allocation7 + $0x6a4] ss:$16 sps:$4 sm:$0xff]  }
 0x285   :  { %2963 = vmatpush1.bf16.msra.mxu1 %v4451_v52  ;;  %v4540_v52 = vld [vmem:[#allocation7 + $0x6ac] ss:$16 sps:$4 sm:$0xff]  }
 0x286   :  { %3127 = vmatpush1.bf16.msra.mxu0 %v4454_v53  ;;  %2964 = vmatprep.subr.bf16.mxu1 %v4459_v54  ;;  %v4535_v53 = vld [vmem:[#allocation7 + $0x6a0] ss:$16 sps:$4 sm:$0xff]   ;;  %v4538_v54 = vld [vmem:[#allocation7 + $0x6a8] ss:$16 sps:$4 sm:$0xff]  }
 0x287   :  { %3128 = vmatprep.subr.bf16.mxu0 %v4462_v56  ;;  %v4543_v56 = vld [vmem:[#allocation7 + $0x6c4] ss:$16 sps:$4 sm:$0xff]  }
 0x289   :  { %2965 = vmatpush1.bf16.msra.mxu1 %v4457_v57  ;;  %v4546_v57 = vld [vmem:[#allocation7 + $0x6cc] ss:$16 sps:$4 sm:$0xff]  }
 0x28a   :  { %3129 = vmatpush1.bf16.msra.mxu0 %v4460_v58  ;;  %2966 = vmatprep.subr.bf16.mxu1 %v4465_v59  ;;  %v4541_v58 = vld [vmem:[#allocation7 + $0x6c0] ss:$16 sps:$4 sm:$0xff]   ;;  %v4544_v59 = vld [vmem:[#allocation7 + $0x6c8] ss:$16 sps:$4 sm:$0xff]  }
 0x28b   :  { %3130 = vmatprep.subr.bf16.mxu0 %v4468_v63  ;;  %v4549_v63 = vld [vmem:[#allocation7 + $0x6e4] ss:$16 sps:$4 sm:$0xff]  }
 0x28d   :  { %2967 = vmatpush1.bf16.msra.mxu1 %v4463_v0  ;;  %v4552_v0 = vld [vmem:[#allocation7 + $0x6ec] ss:$16 sps:$4 sm:$0xff]  }
 0x28e   :  { %3131 = vmatpush1.bf16.msra.mxu0 %v4466_v2  ;;  %2968 = vmatprep.subr.bf16.mxu1 %v4471_v3  ;;  %v4547_v2 = vld [vmem:[#allocation7 + $0x6e0] ss:$16 sps:$4 sm:$0xff]   ;;  %v4550_v3 = vld [vmem:[#allocation7 + $0x6e8] ss:$16 sps:$4 sm:$0xff]  }
 0x28f   :  { %3132 = vmatprep.subr.bf16.mxu0 %v4474_v4  ;;  %v4555_v4 = vld [vmem:[#allocation7 + $0x704] ss:$16 sps:$4 sm:$0xff]  }
 0x291   :  { %2969 = vmatpush1.bf16.msra.mxu1 %v4469_v5  ;;  %v4558_v5 = vld [vmem:[#allocation7 + $0x70c] ss:$16 sps:$4 sm:$0xff]  }
 0x292   :  { %3133 = vmatpush1.bf16.msra.mxu0 %v4472_v55  ;;  %2970 = vmatprep.subr.bf16.mxu1 %v4477_v6  ;;  %v4553_v55 = vld [vmem:[#allocation7 + $0x700] ss:$16 sps:$4 sm:$0xff]   ;;  %v4556_v6 = vld [vmem:[#allocation7 + $0x708] ss:$16 sps:$4 sm:$0xff]  }
 0x293   :  { %3134 = vmatprep.subr.bf16.mxu0 %v4480_v7  ;;  %v4561_v7 = vld [vmem:[#allocation7 + $0x724] ss:$16 sps:$4 sm:$0xff]  }
 0x295   :  { %2971 = vmatpush1.bf16.msra.mxu1 %v4475_v8  ;;  %v4564_v8 = vld [vmem:[#allocation7 + $0x72c] ss:$16 sps:$4 sm:$0xff]  }
 0x296   :  { %3135 = vmatpush1.bf16.msra.mxu0 %v4478_v9  ;;  %2972 = vmatprep.subr.bf16.mxu1 %v4483_v10  ;;  %v4559_v9 = vld [vmem:[#allocation7 + $0x720] ss:$16 sps:$4 sm:$0xff]   ;;  %v4562_v10 = vld [vmem:[#allocation7 + $0x728] ss:$16 sps:$4 sm:$0xff]  }
 0x297   :  { %3136 = vmatprep.subr.bf16.mxu0 %v4486_v11  ;;  %v4567_v11 = vld [vmem:[#allocation7 + $0x744] ss:$16 sps:$4 sm:$0xff]  }
 0x299   :  { %2973 = vmatpush1.bf16.msra.mxu1 %v4481_v14  ;;  %v4570_v14 = vld [vmem:[#allocation7 + $0x74c] ss:$16 sps:$4 sm:$0xff]  }
 0x29a   :  { %3137 = vmatpush1.bf16.msra.mxu0 %v4484_v15  ;;  %2974 = vmatprep.subr.bf16.mxu1 %v4489_v16  ;;  %v4565_v15 = vld [vmem:[#allocation7 + $0x740] ss:$16 sps:$4 sm:$0xff]   ;;  %v4568_v16 = vld [vmem:[#allocation7 + $0x748] ss:$16 sps:$4 sm:$0xff]  }
 0x29b   :  { %3138 = vmatprep.subr.bf16.mxu0 %v4492_v17  ;;  %v4573_v17 = vld [vmem:[#allocation7 + $0x764] ss:$16 sps:$4 sm:$0xff]  }
 0x29d   :  { %2975 = vmatpush1.bf16.msra.mxu1 %v4487_v18  ;;  %v4576_v18 = vld [vmem:[#allocation7 + $0x76c] ss:$16 sps:$4 sm:$0xff]  }
 0x29e   :  { %3139 = vmatpush1.bf16.msra.mxu0 %v4490_v20  ;;  %2976 = vmatprep.subr.bf16.mxu1 %v4495_v21  ;;  %v4571_v20 = vld [vmem:[#allocation7 + $0x760] ss:$16 sps:$4 sm:$0xff]   ;;  %v4574_v21 = vld [vmem:[#allocation7 + $0x768] ss:$16 sps:$4 sm:$0xff]  }
 0x29f   :  { %3140 = vmatprep.subr.bf16.mxu0 %v4498_v22  ;;  %v4579_v22 = vld [vmem:[#allocation7 + $0x784] ss:$16 sps:$4 sm:$0xff]  }
 0x2a1   :  { %2977 = vmatpush1.bf16.msra.mxu1 %v4493_v23  ;;  %v4582_v23 = vld [vmem:[#allocation7 + $0x78c] ss:$16 sps:$4 sm:$0xff]  }
 0x2a2   :  { %3141 = vmatpush1.bf16.msra.mxu0 %v4496_v24  ;;  %2978 = vmatprep.subr.bf16.mxu1 %v4501_v25  ;;  %v4577_v24 = vld [vmem:[#allocation7 + $0x780] ss:$16 sps:$4 sm:$0xff]   ;;  %v4580_v25 = vld [vmem:[#allocation7 + $0x788] ss:$16 sps:$4 sm:$0xff]  }
 0x2a3   :  { %3142 = vmatprep.subr.bf16.mxu0 %v4504_v27  ;;  %v4585_v27 = vld [vmem:[#allocation7 + $0x7a4] ss:$16 sps:$4 sm:$0xff]  }
 0x2a5   :  { %2979 = vmatpush1.bf16.msra.mxu1 %v4499_v28  ;;  %v4588_v28 = vld [vmem:[#allocation7 + $0x7ac] ss:$16 sps:$4 sm:$0xff]  }
 0x2a6   :  { %3143 = vmatpush1.bf16.msra.mxu0 %v4502_v29  ;;  %2989 = vmatprep.subr.bf16.mxu1 %v4507_v32  ;;  %v4583_v29 = vld [vmem:[#allocation7 + $0x7a0] ss:$16 sps:$4 sm:$0xff]   ;;  %v4586_v32 = vld [vmem:[#allocation7 + $0x7a8] ss:$16 sps:$4 sm:$0xff]  }
 0x2a7   :  { %3153 = vmatprep.subr.bf16.mxu0 %v4510_v26  ;;  %v4591_v26 = vld [vmem:[#allocation7 + $0x7c4] ss:$16 sps:$4 sm:$0xff]  }
 0x2a8   :  { %2981 = vmatmul.mubr.bf16.vlgmr.msra.gmra.mrb[8].mxu1 %v1326_v35 }
 0x2a9   :  { %3145 = vmatmul.mubr.bf16.vlgmr.msra.gmra.mrb[12].mxu0 %v1326_v35  ;;  %2990 = vmatpush1.bf16.msra.mxu1 %v4505_v34  ;;  %v4594_v34 = vld [vmem:[#allocation7 + $0x7cc] ss:$16 sps:$4 sm:$0xff]   ;;  %v4589_v35 = vld [vmem:[#allocation7 + $0x7c0] ss:$16 sps:$4 sm:$0xff]  }
 0x2aa   :  { %3021 = vmatprep.mubr.bf16.mxu1 %v1329_v38  ;;  %3154 = vmatpush1.bf16.msra.mxu0 %v4508_v36  ;;  %v4592_v36 = vld [vmem:[#allocation7 + $0x7c8] ss:$16 sps:$4 sm:$0xff]  }
 0x2ab   :  { %3185 = vmatprep.mubr.bf16.mxu0 %v1329_v38  ;;  %2991 = vmatprep.subr.bf16.mxu1 %v4513_v37  ;;  %v4597_v37 = vld [vmem:[#allocation7 + $0x7e4] ss:$16 sps:$4 sm:$0xff]   ;;  %v4600_v38 = vld [vmem:[#allocation7 + $0x7ec] ss:$16 sps:$4 sm:$0xff]  }
 0x2ac   :  { %3155 = vmatprep.subr.bf16.mxu0 %v4516_v39  ;;  %v4595_v39 = vld [vmem:[#allocation7 + $0x7e0] ss:$16 sps:$4 sm:$0xff]  }
 0x2ad   :  { %2992 = vmatpush1.bf16.msra.mxu1 %v4511_v40  ;;  %v4598_v40 = vld [vmem:[#allocation7 + $0x7e8] ss:$16 sps:$4 sm:$0xff]  }
 0x2ae   :  { %3156 = vmatpush1.bf16.msra.mxu0 %v4514_v41  ;;  %2993 = vmatprep.subr.bf16.mxu1 %v4519_v42  ;;  %v4601_v41 = vld [vmem:[#allocation8 + $0x40] sm:$0xff]  }
 0x2af   :  { %3157 = vmatprep.subr.bf16.mxu0 %v4522_v12  ;;  %v4602_v42 = vld [vmem:[#allocation8 + $0xc0] sm:$0xff]  }
 0x2b0   :  { %v4603_v12 = vld [vmem:[#allocation8] sm:$0xff]  }
 0x2b1   :  { %2994 = vmatpush1.bf16.msra.mxu1 %v4517_v43  ;;  %v1328_v43 = vmax.bf16 %v4739_v1, %v4921_v13  ;;  %v4612_v13 = vld [vmem:[#allocation8 + $0x90] sm:$0xff]  }
 0x2b2   :  { %3158 = vmatpush1.bf16.msra.mxu0 %v4520_v44  ;;  %2995 = vmatprep.subr.bf16.mxu1 %v4525_v45  ;;  %v4604_v44 = vld [vmem:[#allocation8 + $0x80] sm:$0xff]   ;;  %v4605_v45 = vld [vmem:[#allocation8 + $0x48] sm:$0xff]  }
 0x2b3   :  { %3159 = vmatprep.subr.bf16.mxu0 %v4528_v19  ;;  %v4606_v19 = vld [vmem:[#allocation8 + $0xc8] sm:$0xff]  }
 0x2b5   :  { %2996 = vmatpush1.bf16.msra.mxu1 %v4523_v46  ;;  %v4607_v46 = vld [vmem:[#allocation8 + $0x8] sm:$0xff]  }
 0x2b6   :  { %3160 = vmatpush1.bf16.msra.mxu0 %v4526_v47  ;;  %2997 = vmatprep.subr.bf16.mxu1 %v4531_v61  ;;  %v4608_v47 = vld [vmem:[#allocation8 + $0x88] sm:$0xff]   ;;  %v4609_v61 = vld [vmem:[#allocation8 + $0x50] sm:$0xff]  }
 0x2b7   :  { %3161 = vmatprep.subr.bf16.mxu0 %v4534_v48  ;;  %v4610_v48 = vld [vmem:[#allocation8 + $0xd0] sm:$0xff]  }
 0x2b9   :  { %2998 = vmatpush1.bf16.msra.mxu1 %v4529_v49  ;;  %v4611_v49 = vld [vmem:[#allocation8 + $0x10] sm:$0xff]  }
 0x2ba   :  { %3162 = vmatpush1.bf16.msra.mxu0 %v4532_v50  ;;  %2999 = vmatprep.subr.bf16.mxu1 %v4537_v51  ;;  %v4613_v50 = vld [vmem:[#allocation8 + $0x58] sm:$0xff]  }
 0x2bb   :  { %3163 = vmatprep.subr.bf16.mxu0 %v4540_v52  ;;  %v4614_v51 = vld [vmem:[#allocation8 + $0xd8] sm:$0xff]  }
 0x2bc   :  { %v4615_v52 = vld [vmem:[#allocation8 + $0x18] sm:$0xff]  }
 0x2bd   :  { %3000 = vmatpush1.bf16.msra.mxu1 %v4535_v53  ;;  %v4616_v53 = vld [vmem:[#allocation8 + $0x98] sm:$0xff]  }
 0x2be   :  { %3164 = vmatpush1.bf16.msra.mxu0 %v4538_v54  ;;  %3001 = vmatprep.subr.bf16.mxu1 %v4543_v56  ;;  %v4617_v54 = vld [vmem:[#allocation8 + $0x60] sm:$0xff]  }
 0x2bf   :  { %3165 = vmatprep.subr.bf16.mxu0 %v4546_v57  ;;  %v4618_v56 = vld [vmem:[#allocation8 + $0xe0] sm:$0xff]  }
 0x2c0   :  { %v4619_v57 = vld [vmem:[#allocation8 + $0x20] sm:$0xff]  }
 0x2c1   :  { %3002 = vmatpush1.bf16.msra.mxu1 %v4541_v58  ;;  %v4620_v58 = vld [vmem:[#allocation8 + $0xa0] sm:$0xff]  }
 0x2c2   :  { %3166 = vmatpush1.bf16.msra.mxu0 %v4544_v59  ;;  %3003 = vmatprep.subr.bf16.mxu1 %v4549_v63  ;;  %v4621_v59 = vld [vmem:[#allocation8 + $0x68] sm:$0xff]  }
 0x2c3   :  { %3167 = vmatprep.subr.bf16.mxu0 %v4552_v0  ;;  %v4622_v63 = vld [vmem:[#allocation8 + $0xe8] sm:$0xff]  }
 0x2c4   :  { %v4623_v0 = vld [vmem:[#allocation8 + $0x28] sm:$0xff]  }
 0x2c5   :  { %3004 = vmatpush1.bf16.msra.mxu1 %v4547_v2  ;;  %v4624_v2 = vld [vmem:[#allocation8 + $0xa8] sm:$0xff]  }
 0x2c6   :  { %3168 = vmatpush1.bf16.msra.mxu0 %v4550_v3  ;;  %3005 = vmatprep.subr.bf16.mxu1 %v4555_v4  ;;  %v4625_v3 = vld [vmem:[#allocation8 + $0x70] sm:$0xff]  }
 0x2c7   :  { %3169 = vmatprep.subr.bf16.mxu0 %v4558_v5  ;;  %v4626_v4 = vld [vmem:[#allocation8 + $0xf0] sm:$0xff]  }
 0x2c8   :  { %v4627_v5 = vld [vmem:[#allocation8 + $0x30] sm:$0xff]  }
 0x2c9   :  { %3006 = vmatpush1.bf16.msra.mxu1 %v4553_v55  ;;  %v4628_v55 = vld [vmem:[#allocation8 + $0xb0] sm:$0xff]  }
 0x2ca   :  { %3170 = vmatpush1.bf16.msra.mxu0 %v4556_v6  ;;  %3007 = vmatprep.subr.bf16.mxu1 %v4561_v7  ;;  %v4629_v6 = vld [vmem:[#allocation8 + $0x78] sm:$0xff]  }
 0x2cb   :  { %3171 = vmatprep.subr.bf16.mxu0 %v4564_v8  ;;  %v4630_v7 = vld [vmem:[#allocation8 + $0xf8] sm:$0xff]  }
 0x2cc   :  { %v4631_v8 = vld [vmem:[#allocation8 + $0x38] sm:$0xff]  }
 0x2cd   :  { %3008 = vmatpush1.bf16.msra.mxu1 %v4559_v9  ;;  %v4632_v9 = vld [vmem:[#allocation8 + $0xb8] sm:$0xff]  }
 0x2ce   :  { %3172 = vmatpush1.bf16.msra.mxu0 %v4562_v10  ;;  %3009 = vmatprep.subr.bf16.mxu1 %v4567_v11  ;;  %v3198_v10 = vld [vmem:[%s4968_s6] sm:$0xf] }
 0x2cf   :  { %3173 = vmatprep.subr.bf16.mxu0 %v4570_v14  ;;  %v3203_v11 = vrot.slane %v3198_v10, %v4861_v31  ;;  %v3211_v14 = vrot.slane %v3198_v10, %v1220_v60 }
 0x2d1   :  { %3010 = vmatpush1.bf16.msra.mxu1 %v4565_v15  ;;  %v3207_v15 = vrot.slane %v3198_v10, %v4867_v33 }
 0x2d2   :  { %3174 = vmatpush1.bf16.msra.mxu0 %v4568_v16  ;;  %3011 = vmatprep.subr.bf16.mxu1 %v4573_v17  ;;  %v3215_v16 = vrot.slane %v3198_v10, %v1224_v62  ;;  %v3220_v17 = vpack.c.bf16 %v3203_v11, %v3203_v11 }
 0x2d3   :  { %3175 = vmatprep.subr.bf16.mxu0 %v4576_v18  ;;  %v3222_v18 = vpack.c.bf16 %v3211_v14, %v3211_v14 }
 0x2d5   :  { %3012 = vmatpush1.bf16.msra.mxu1 %v4571_v20  ;;  %v3221_v20 = vpack.c.bf16 %v3207_v15, %v3207_v15 }
 0x2d6   :  { %3176 = vmatpush1.bf16.msra.mxu0 %v4574_v21  ;;  %3013 = vmatprep.subr.bf16.mxu1 %v4579_v22  ;;  %v3223_v21 = vpack.c.bf16 %v3215_v16, %v3215_v16  ;;  %v3225_v22 = vpack.i.b16 %v3220_v17, %v3220_v17 }
 0x2d7   :  { %3177 = vmatprep.subr.bf16.mxu0 %v4582_v23  ;;  %v3239_v23 = vpack.i.b16 %v3222_v18, %v3222_v18 }
 0x2d9   :  { %3014 = vmatpush1.bf16.msra.mxu1 %v4577_v24  ;;  %v3232_v24 = vpack.i.b16 %v3221_v20, %v3221_v20 }
 0x2da   :  { %3178 = vmatpush1.bf16.msra.mxu0 %v4580_v25  ;;  %3015 = vmatprep.subr.bf16.mxu1 %v4585_v27  ;;  %v3246_v25 = vpack.i.b16 %v3223_v21, %v3223_v21  ;;  %v3230_v27 = vrot.slane %v3225_v22, %v4861_v31 }
 0x2db   :  { %3179 = vmatprep.subr.bf16.mxu0 %v4588_v28  ;;  %v3237_v60 = vrot.slane %v3232_v24, %v4861_v31 }
 0x2dc   :  { %v3251_v30 = vrot.slane %v3246_v25, %v4861_v31 }
 0x2dd   :  { %3016 = vmatpush1.bf16.msra.mxu1 %v4583_v29  ;;  %v3244_v29 = vrot.slane %v3239_v23, %v4861_v31 }
 0x2de   :  { %3180 = vmatpush1.bf16.msra.mxu0 %v4586_v32  ;;  %3017 = vmatprep.subr.bf16.mxu1 %v4591_v26 }
 0x2df   :  { %3181 = vmatprep.subr.bf16.mxu0 %v4594_v34 }
 0x2e1   :  { %3018 = vmatpush1.bf16.msra.mxu1 %v4589_v35 }
 0x2e2   :  { %3182 = vmatpush1.bf16.msra.mxu0 %v4592_v36  ;;  %3019 = vmatprep.subr.bf16.mxu1 %v4597_v37 }
 0x2e3   :  { %3183 = vmatprep.subr.bf16.mxu0 %v4600_v38 }
 0x2e5   :  { %3020 = vmatpush1.bf16.msra.mxu1 %v4595_v39 }
 0x2e6   :  { %3184 = vmatpush1.bf16.msra.mxu0 %v4598_v40  ;;  %4101 = vmatprep.subr.bf16.mxu1 %v4601_v41 }
 0x2e7   :  { %4123 = vmatprep.subr.bf16.mxu0 %v4602_v42 }
 0x2e8   :  { %3022 = vmatmul.mubr.bf16.vlgmr.msra.gmra.mrb[8].mxu1 %v1328_v43 }
 0x2e9   :  { %3186 = vmatmul.mubr.bf16.vlgmr.msra.gmra.mrb[12].mxu0 %v1328_v43  ;;  %4102 = vmatpush3.bf16.msra.mxu1 %v4603_v12 }
 0x2ea   :  { %4124 = vmatpush3.bf16.msra.mxu0 %v4604_v44  ;;  %4103 = vmatprep.subr.bf16.mxu1 %v4605_v45 }
 0x2eb   :  { %4125 = vmatprep.subr.bf16.mxu0 %v4606_v19 }
 0x2ed   :  { %4104 = vmatpush3.bf16.msra.mxu1 %v4607_v46 }
 0x2ee   :  { %4126 = vmatpush3.bf16.msra.mxu0 %v4608_v47  ;;  %4105 = vmatprep.subr.bf16.mxu1 %v4609_v61  ;;  %v4740_v47 = vmov 0.0   ;;  %v4100_v61 = vld [vmem:[#allocation2] ss:$0 sm:$0xff] }
 0x2ef   :  { %4127 = vmatprep.subr.bf16.mxu0 %v4610_v48  ;;  %3616 = vperm.xlu0 %4192, %v4100_v61   ;;  %v3597_v48 = vld [vmem:[%s4970_s8] sm:$0x1] }
 0x2f1   :  { %4106 = vmatpush3.bf16.msra.mxu1 %v4611_v49  ;;  %v3598_v49 = vpack.c.bf16 %v3597_v48, %v3597_v48 }
 0x2f2   :  { %4128 = vmatpush3.bf16.msra.mxu0 %v4612_v13  ;;  %4107 = vmatprep.subr.bf16.mxu1 %v4613_v50 }
 0x2f3   :  { %4129 = vmatprep.subr.bf16.mxu0 %v4614_v51 }
 0x2f5   :  { %4108 = vmatpush3.bf16.msra.mxu1 %v4615_v52  ;;  %v3600_v52 = vpack.i.b16 %v3598_v49, %v3598_v49 }
 0x2f6   :  { %4130 = vmatpush3.bf16.msra.mxu0 %v4616_v53  ;;  %4109 = vmatprep.subr.bf16.mxu1 %v4617_v54 }
 0x2f7   :  { %4131 = vmatprep.subr.bf16.mxu0 %v4618_v56 }
 0x2f9   :  { %4110 = vmatpush3.bf16.msra.mxu1 %v4619_v57 }
 0x2fa   :  { %4132 = vmatpush3.bf16.msra.mxu0 %v4620_v58  ;;  %4111 = vmatprep.subr.bf16.mxu1 %v4621_v59 }
 0x2fb   :  { %4133 = vmatprep.subr.bf16.mxu0 %v4622_v63 }
 0x2fd   :  { %4112 = vmatpush3.bf16.msra.mxu1 %v4623_v0 }
 0x2fe   :  { %4134 = vmatpush3.bf16.msra.mxu0 %v4624_v2  ;;  %4113 = vmatprep.subr.bf16.mxu1 %v4625_v3  ;;  %v3605_v2 = vrot.slane %v3600_v52, %v4861_v31 }
 0x2ff   :  { %4135 = vmatprep.subr.bf16.mxu0 %v4626_v4 }
 0x301   :  { %4114 = vmatpush3.bf16.msra.mxu1 %v4627_v5 }
 0x302   :  { %4136 = vmatpush3.bf16.msra.mxu0 %v4628_v55  ;;  %4115 = vmatprep.subr.bf16.mxu1 %v4629_v6  ;;  %v3608_v55 = vld [vmem:[%s4971_s9] sm:$0xf] }
 0x303   :  { %4137 = vmatprep.subr.bf16.mxu0 %v4630_v7 }
 0x305   :  { %4116 = vmatpush3.bf16.msra.mxu1 %v4631_v8 }
 0x306   :  { %4138 = vmatpush3.bf16.msra.mxu0 %v4632_v9  ;;  %4147 = vmatprep.subr.bf16.mxu1 %v4740_v47 }
 0x36e   :  { %v3617_v6 = vpop.permute.xlu0 %3616 }
 0x3bb   :  { %v3023_v28 = vpop.f32.mrb[8].mxu1 }
 0x3bc   :  { %v3194_v32 = vpack.c.bf16 %v3023_v28, %v3023_v28  ;;  %v3187_v33 = vpop.f32.mrb[12].mxu0  ;;  %v3025_v26 = vpop.f32.mrb[9].mxu1 }
 0x3bd   :  { %v3196_v62 = vpack.c.bf16 %v3187_v33, %v3187_v33  ;;  %v3195_v34 = vpack.c.bf16 %v3025_v26, %v3025_v26  ;;  %v3189_v35 = vpop.f32.mrb[13].mxu0  ;;  %v3027_v36 = vpop.f32.mrb[10].mxu1 }
 0x3be   :  { %v3252_v37 = vadd.bf16 %v3230_v27, %v3194_v32  ;;  %v3197_v38 = vpack.c.bf16 %v3189_v35, %v3189_v35  ;;  %v3191_v39 = vpop.f32.mrb[14].mxu0  ;;  %v3028_v40 = vpop.f32.mrb[11].mxu1 }
 0x3bf   :  { %v3254_v41 = vadd.bf16 %v3244_v29, %v3196_v62  ;;  %v3253_v42 = vadd.bf16 %v3237_v60, %v3195_v34  ;;  %v3192_v12 = vpop.f32.mrb[15].mxu0 }
 0x3c0   :  { %v3255_v43 = vadd.bf16 %v3251_v30, %v3197_v38  ;;  %v3256_v45 = vmax.bf16 %v4739_v1, %v3252_v37 }
 0x3c1   :  { %v3257_v44 = vmax.bf16 %v4739_v1, %v3253_v42  ;;  %v3258_v46 = vmax.bf16 %v4739_v1, %v3254_v41 }
 0x3c2   :  { %v3259_v19 = vmax.bf16 %v4739_v1, %v3255_v43 }
 0x3c3   :  { %3548 = vmatprep.mubr.bf16.mxu1 %v3257_v44 }
 0x3c4   :  { %3588 = vmatprep.mubr.bf16.mxu0 %v3259_v19  ;;  %3549 = vmatmul.mubr.bf16.vlgmr.msra.gmra.mrb[12].mxu1 %v3256_v45 }
 0x3c5   :  { %3589 = vmatmul.mubr.bf16.vlgmr.msra.gmra.mrb[16].mxu0 %v3258_v46  ;;  %4149 = vmatprep.mubr.msk.bf16.mxu1 %vm4741_vm0, %v4740_v47 }
 0x497   :  { %v4117_v13 = vpop.f32.mrb[12].mxu1 }
 0x498   :  { %v4139_v50 = vpop.f32.mrb[16].mxu0  ;;  %v4118_v51 = vpop.f32.mrb[13].mxu1 }
 0x499   :  { %v4119_v53 = vadd.f32 %v4118_v51, %v4117_v13  ;;  %v4140_v54 = vpop.f32.mrb[17].mxu0  ;;  %v4120_v56 = vpop.f32.mrb[14].mxu1 }
 0x49a   :  { %v4141_v57 = vadd.f32 %v4140_v54, %v4139_v50  ;;  %v4142_v58 = vpop.f32.mrb[18].mxu0  ;;  %v4121_v59 = vpop.f32.mrb[15].mxu1 }
 0x49b   :  { %v4143_v63 = vpop.f32.mrb[19].mxu0 }
 0x49c   :  { %v3591_v0 = vadd.f32 %v4141_v57, %v4119_v53 }
 0x49e   :  { %v3596_v3 = vpack.c.bf16 %v3591_v0, %v3591_v0 }
 0x4a0   :  { %v3606_v4 = vadd.bf16 %v3605_v2, %v3596_v3 }
 0x4a2   :  { %v3607_v5 = vmax.bf16 %v4739_v1, %v3606_v4 }
 0x4a4   :  { %4148 = vmatpush3.bf16.xpose.msra.mxu1 %v3607_v5 }
 0x4ab   :  { %4150 = vmatmul.mubr.bf16.vlgmr.msra.gmra.mrb[16].mxu1 %v3608_v55 }
 0x57e   :  { %v3653_v7 = vpop.f32.mrb[16].mxu1 }
 0x57f   :  { %v3654_v8 = vadd.f32 %v3653_v7, %v3617_v6  ;;  %v4151_v9 = vpop.f32.mrb[17].mxu1 }
 0x580   :  { %v3656_v10 = vpop.f32.mrb[18].mxu1 }
 0x581   :  { %3660 = vst.msk [vmem:[%s4973_s11] sm:$0xff] %vm3659_vm1, %v3654_v8  ;;  %v4152_v31 = vpop.f32.mrb[19].mxu1 }
 0x582   :  { %3665 = vsyncpa [#allocation4], 1 }
 0x583   :  { %3666 = vsyncpa [#allocation6], 1 }
 0x584   :  { %3667 = vsyncpa [#allocation9], 1 }

</bundles_post_ra>
